<compile_context>
chip_gen: v7x
topology: tpu7x:2x2x1
jax: 0.10.0
libtpu: 0.0.40
codegen_flags: <defaults>
</compile_context>

<pallas_src>
import numpy as np
import jax
import jax.numpy as jnp
from jax import lax
from jax.experimental import pallas as pl
from jax.experimental.pallas import tpu as pltpu

HIDDEN_DIM = 32
INPUT_DIM = 1
NUM_LAYERS = 2          # hard-coded as 2 stacked LSTM layers in the kernel
OUTPUT_DIM = 1


def _gate_activations(g, H):
    """One full-width EUP tanh covers the i/f/o sigmoids; one tanh for g-gate.

    sigmoid(z) == 0.5 * tanh(0.5 * z) + 0.5  (no divide, single EUP op on the
    whole (B, 4H) vreg — a quarter-filled 32-lane slice costs the same as 128).
    """
    sig = 0.5 * jnp.tanh(0.5 * g) + 0.5          # (B, 4H)
    i = sig[:, 0:H]
    f = sig[:, H:2 * H]
    o = sig[:, 3 * H:4 * H]
    gg = jnp.tanh(g[:, 2 * H:3 * H])
    return i, f, gg, o


def lstm_kernel(x_ref,            # (T, B, Din)      time-major input
                wih0_ref,         # (Din, 4H)        layer-0 input weights (transposed)
                whh0_ref,         # (H,   4H)        layer-0 hidden weights (transposed)
                b0_ref,           # (1,   4H)        layer-0 combined bias (b_ih + b_hh)
                w1_ref,           # (2H,  4H)        layer-1 stacked [wih1; whh1] (transposed)
                b1_ref,           # (1,   4H)        layer-1 combined bias
                wfc_ref,          # (H,   Dout)      fc weight (transposed)
                bfc_ref,          # (1,   Dout)      fc bias
                out_ref):         # (B,   Dout)
    x = x_ref[...]                                   # (T, B, Din), already f32
    wih0 = wih0_ref[...]                             # (Din, 4H)
    whh0 = whh0_ref[...]                             # (H,   4H)
    b0 = b0_ref[...]                                 # (1,   4H)
    w1 = w1_ref[...]                                 # (2H,  4H)

    T, B, Din = x.shape
    H = whh0.shape[0]
    G = 4 * H

    # ---- layer-0 input projection for all timesteps (off the critical path) ----
    if Din == 1:
        # K=1 contraction == outer product: do it on the VPU, keep the MXU free.
        xproj = x * wih0[None, :, :] + b0[None, :, :]            # (T, B, 4H)
    else:
        xproj = (jnp.dot(x.reshape(T * B, Din), wih0,
                         preferred_element_type=jnp.float32).reshape(T, B, G)
                 + b0[None, :, :])

    # Hoist the (1,4H)->(B,4H) bias broadcast out of the recurrence body.
    b1_b = jnp.broadcast_to(b1_ref[...], (B, G))                 # (B, 4H)

    h0 = jnp.zeros((B, H), jnp.float32)
    c0 = jnp.zeros((B, H), jnp.float32)
    h1 = jnp.zeros((B, H), jnp.float32)
    c1 = jnp.zeros((B, H), jnp.float32)

    # Fully unrolled time loop: T is static and small, so every xproj[t] is a
    # static slice and the scheduler can overlap adjacent-step work.
    # TODO(synk): for large B, add a batch grid axis ("parallel" for v7x's 2nd
    # TensorCore) and consider pinning whh0/w1 via pltpu.matmul_push_rhs.
    for t in range(T):
        # ---- layer 0: single recurrent matmul (H, 4H) ----
        g0 = xproj[t] + jnp.dot(h0, whh0, preferred_element_type=jnp.float32)
        i0, f0, gg0, o0 = _gate_activations(g0, H)
        c0 = f0 * c0 + i0 * gg0
        h0 = o0 * jnp.tanh(c0)

        # ---- layer 1: fused input+hidden matmul (2H, 4H) ----
        h01 = jnp.concatenate([h0, h1], axis=1)                  # (B, 2H)
        g1 = jnp.dot(h01, w1, preferred_element_type=jnp.float32) + b1_b
        i1, f1, gg1, o1 = _gate_activations(g1, H)
        c1 = f1 * c1 + i1 * gg1
        h1 = o1 * jnp.tanh(c1)

    # Final Linear on the last-timestep output of the top layer.
    out = jnp.dot(h1, wfc_ref[...], preferred_element_type=jnp.float32) + bfc_ref[...]
    out_ref[...] = out.astype(out_ref.dtype)


def lstm_forward(x_btd, params):
    """x_btd: (B, T, Din) batch-first like the PyTorch module."""
    B, T, Din = x_btd.shape
    Dout = params["wfc"].shape[1]

    x_tbd = jnp.transpose(x_btd, (1, 0, 2)).astype(jnp.float32)  # glue: time-major

    # Fuse layer-1 weights: g1 = [h0 | h1] @ [wih1; whh1] + b1
    w1_stacked = jnp.concatenate([params["wih1"], params["whh1"]], axis=0)  # (2H, 4H)

    args = (x_tbd,
            params["wih0"], params["whh0"], params["b0"],
            w1_stacked, params["b1"],
            params["wfc"], params["bfc"])

    vmem = pl.BlockSpec(memory_space=pltpu.MemorySpace.VMEM)

    return pl.pallas_call(
        lstm_kernel,
        out_shape=jax.ShapeDtypeStruct((B, Dout), jnp.float32),
        in_specs=[vmem] * len(args),
        out_specs=vmem,
    )(*args)


def init_params(key, input_dim, hidden_dim, output_dim):
    """Deterministic, PyTorch-style uniform(-1/sqrt(H), 1/sqrt(H)) init."""
    k = 1.0 / np.sqrt(hidden_dim)
    keys = jax.random.split(key, 8)
    u = lambda kk, shape: jax.random.uniform(kk, shape, jnp.float32, -k, k)
    H, G = hidden_dim, 4 * hidden_dim
    return {
        "wih0": u(keys[0], (input_dim, G)),   # transposed weight_ih_l0
        "whh0": u(keys[1], (H, G)),           # transposed weight_hh_l0
        "b0":   u(keys[2], (1, G)),           # bias_ih_l0 + bias_hh_l0 (combined)
        "wih1": u(keys[3], (H, G)),           # transposed weight_ih_l1
        "whh1": u(keys[4], (H, G)),           # transposed weight_hh_l1
        "b1":   u(keys[5], (1, G)),           # bias_ih_l1 + bias_hh_l1 (combined)
        "wfc":  u(keys[6], (H, output_dim)),  # transposed fc.weight
        "bfc":  u(keys[7], (1, output_dim)),  # fc.bias
    }


def reference_forward(x_btd, params):
    """Pure-JAX reference with identical semantics (for verification)."""
    B, T, Din = x_btd.shape
    H = params["whh0"].shape[0]

    def cell(h, c, gates):
        i = jax.nn.sigmoid(gates[:, 0:H])
        f = jax.nn.sigmoid(gates[:, H:2 * H])
        g = jnp.tanh(gates[:, 2 * H:3 * H])
        o = jax.nn.sigmoid(gates[:, 3 * H:4 * H])
        c = f * c + i * g
        h = o * jnp.tanh(c)
        return h, c

    def scan_fn(carry, x_t):
        h0, c0, h1, c1 = carry
        g0 = x_t @ params["wih0"] + h0 @ params["whh0"] + params["b0"]
        h0, c0 = cell(h0, c0, g0)
        g1 = h0 @ params["wih1"] + h1 @ params["whh1"] + params["b1"]
        h1, c1 = cell(h1, c1, g1)
        return (h0, c0, h1, c1), None

    init = tuple(jnp.zeros((B, H), jnp.float32) for _ in range(4))
    (h0, c0, h1, c1), _ = lax.scan(scan_fn, init, jnp.transpose(x_btd, (1, 0, 2)))
    return h1 @ params["wfc"] + params["bfc"]


if __name__ == "__main__":
    key = jax.random.PRNGKey(0)
    k_param, k_x = jax.random.split(key)

    B, T = 2, 8
    params = init_params(k_param, INPUT_DIM, HIDDEN_DIM, OUTPUT_DIM)
    x = jax.random.normal(k_x, (B, T, INPUT_DIM), dtype=jnp.float32)

    out = lstm_forward(x, params)
    out = jax.block_until_ready(out)

    ref = jax.block_until_ready(reference_forward(x, params))
    assert out.shape == (B, OUTPUT_DIM)
    np.testing.assert_allclose(np.asarray(out), np.asarray(ref), rtol=2e-5, atol=2e-5)

    print("KERNEL_OK")
</pallas_src>

<mosaic_0001>
module attributes {stable_mosaic.version = 11 : i64} {
  func.func @lstm_kernel(%arg0: memref<8x2x1xf32, #tpu.memory_space<vmem>>, %arg1: memref<1x128xf32, #tpu.memory_space<vmem>>, %arg2: memref<32x128xf32, #tpu.memory_space<vmem>>, %arg3: memref<1x128xf32, #tpu.memory_space<vmem>>, %arg4: memref<64x128xf32, #tpu.memory_space<vmem>>, %arg5: memref<1x128xf32, #tpu.memory_space<vmem>>, %arg6: memref<32x1xf32, #tpu.memory_space<vmem>>, %arg7: memref<1x1xf32, #tpu.memory_space<vmem>>, %arg8: memref<2x1xf32, #tpu.memory_space<vmem>>) attributes {dimension_semantics = [], scalar_prefetch = 0 : i64, scratch_operands = 0 : i64, tpu.core_type = #tpu.core_type<tc>} {
    %c0 = arith.constant 0 : index
    %c0_0 = arith.constant 0 : index
    %c0_1 = arith.constant 0 : index
    %0 = vector.load %arg0[%c0, %c0_0, %c0_1] : memref<8x2x1xf32, #tpu.memory_space<vmem>>, vector<8x2x1xf32>
    %c0_2 = arith.constant 0 : index
    %c0_3 = arith.constant 0 : index
    %1 = vector.load %arg1[%c0_2, %c0_3] : memref<1x128xf32, #tpu.memory_space<vmem>>, vector<1x128xf32>
    %c0_4 = arith.constant 0 : index
    %c0_5 = arith.constant 0 : index
    %2 = vector.load %arg2[%c0_4, %c0_5] : memref<32x128xf32, #tpu.memory_space<vmem>>, vector<32x128xf32>
    %c0_6 = arith.constant 0 : index
    %c0_7 = arith.constant 0 : index
    %3 = vector.load %arg3[%c0_6, %c0_7] : memref<1x128xf32, #tpu.memory_space<vmem>>, vector<1x128xf32>
    %c0_8 = arith.constant 0 : index
    %c0_9 = arith.constant 0 : index
    %4 = vector.load %arg4[%c0_8, %c0_9] : memref<64x128xf32, #tpu.memory_space<vmem>>, vector<64x128xf32>
    %5 = vector.shape_cast %1 : vector<1x128xf32> to vector<1x1x128xf32>
    %6 = vector.broadcast %0 : vector<8x2x1xf32> to vector<8x2x128xf32>
    %7 = vector.broadcast %5 : vector<1x1x128xf32> to vector<8x2x128xf32>
    %8 = arith.mulf %6, %7 : vector<8x2x128xf32>
    %9 = vector.shape_cast %3 : vector<1x128xf32> to vector<1x1x128xf32>
    %10 = vector.broadcast %9 : vector<1x1x128xf32> to vector<8x2x128xf32>
    %11 = arith.addf %8, %10 : vector<8x2x128xf32>
    %c0_10 = arith.constant 0 : index
    %c0_11 = arith.constant 0 : index
    %12 = vector.load %arg5[%c0_10, %c0_11] : memref<1x128xf32, #tpu.memory_space<vmem>>, vector<1x128xf32>
    %13 = vector.shape_cast %12 : vector<1x128xf32> to vector<1x128xf32>
    %14 = vector.broadcast %13 : vector<1x128xf32> to vector<2x128xf32>
    %cst = arith.constant 0.000000e+00 : f32
    %15 = vector.broadcast %cst : f32 to vector<2x32xf32>
    %cst_12 = arith.constant 0.000000e+00 : f32
    %16 = vector.broadcast %cst_12 : f32 to vector<2x32xf32>
    %cst_13 = arith.constant 0.000000e+00 : f32
    %17 = vector.broadcast %cst_13 : f32 to vector<2x32xf32>
    %cst_14 = arith.constant 0.000000e+00 : f32
    %18 = vector.broadcast %cst_14 : f32 to vector<2x32xf32>
    %19 = vector.extract_strided_slice %11 {offsets = [0, 0, 0], sizes = [1, 2, 128], strides = [1, 1, 1]} : vector<8x2x128xf32> to vector<1x2x128xf32>
    %20 = vector.shape_cast %19 : vector<1x2x128xf32> to vector<2x128xf32>
    %cst_15 = arith.constant dense<0.000000e+00> : vector<2x128xf32>
    %21 = tpu.matmul %15, %2, %cst_15 {dimension_numbers = #tpu.dot_dimension_numbers<[1], [0], [0], [1], [0, 0, 1, 1], [], []>} : vector<2x32xf32>, vector<32x128xf32>, vector<2x128xf32> -> vector<2x128xf32>
    %22 = arith.addf %20, %21 : vector<2x128xf32>
    %cst_16 = arith.constant 5.000000e-01 : f32
    %23 = vector.broadcast %cst_16 : f32 to vector<2x128xf32>
    %24 = arith.mulf %23, %22 : vector<2x128xf32>
    %25 = math.tanh %24 : vector<2x128xf32>
    %cst_17 = arith.constant 5.000000e-01 : f32
    %26 = vector.broadcast %cst_17 : f32 to vector<2x128xf32>
    %27 = arith.mulf %26, %25 : vector<2x128xf32>
    %cst_18 = arith.constant 5.000000e-01 : f32
    %28 = vector.broadcast %cst_18 : f32 to vector<2x128xf32>
    %29 = arith.addf %27, %28 : vector<2x128xf32>
    %30 = vector.extract_strided_slice %29 {offsets = [0, 0], sizes = [2, 32], strides = [1, 1]} : vector<2x128xf32> to vector<2x32xf32>
    %31 = vector.extract_strided_slice %29 {offsets = [0, 32], sizes = [2, 32], strides = [1, 1]} : vector<2x128xf32> to vector<2x32xf32>
    %32 = vector.extract_strided_slice %29 {offsets = [0, 96], sizes = [2, 32], strides = [1, 1]} : vector<2x128xf32> to vector<2x32xf32>
    %33 = vector.extract_strided_slice %22 {offsets = [0, 64], sizes = [2, 32], strides = [1, 1]} : vector<2x128xf32> to vector<2x32xf32>
    %34 = math.tanh %33 : vector<2x32xf32>
    %35 = arith.mulf %31, %16 : vector<2x32xf32>
    %36 = arith.mulf %30, %34 : vector<2x32xf32>
    %37 = arith.addf %35, %36 : vector<2x32xf32>
    %38 = math.tanh %37 : vector<2x32xf32>
    %39 = arith.mulf %32, %38 : vector<2x32xf32>
    %40 = tpu.concatenate %39, %17 in 1 : vector<2x32xf32>, vector<2x32xf32> -> vector<2x64xf32>
    %cst_19 = arith.constant dense<0.000000e+00> : vector<2x128xf32>
    %41 = tpu.matmul %40, %4, %cst_19 {dimension_numbers = #tpu.dot_dimension_numbers<[1], [0], [0], [1], [0, 0, 1, 1], [], []>} : vector<2x64xf32>, vector<64x128xf32>, vector<2x128xf32> -> vector<2x128xf32>
    %42 = arith.addf %41, %14 : vector<2x128xf32>
    %cst_20 = arith.constant 5.000000e-01 : f32
    %43 = vector.broadcast %cst_20 : f32 to vector<2x128xf32>
    %44 = arith.mulf %43, %42 : vector<2x128xf32>
    %45 = math.tanh %44 : vector<2x128xf32>
    %cst_21 = arith.constant 5.000000e-01 : f32
    %46 = vector.broadcast %cst_21 : f32 to vector<2x128xf32>
    %47 = arith.mulf %46, %45 : vector<2x128xf32>
    %cst_22 = arith.constant 5.000000e-01 : f32
    %48 = vector.broadcast %cst_22 : f32 to vector<2x128xf32>
    %49 = arith.addf %47, %48 : vector<2x128xf32>
    %50 = vector.extract_strided_slice %49 {offsets = [0, 0], sizes = [2, 32], strides = [1, 1]} : vector<2x128xf32> to vector<2x32xf32>
    %51 = vector.extract_strided_slice %49 {offsets = [0, 32], sizes = [2, 32], strides = [1, 1]} : vector<2x128xf32> to vector<2x32xf32>
    %52 = vector.extract_strided_slice %49 {offsets = [0, 96], sizes = [2, 32], strides = [1, 1]} : vector<2x128xf32> to vector<2x32xf32>
    %53 = vector.extract_strided_slice %42 {offsets = [0, 64], sizes = [2, 32], strides = [1, 1]} : vector<2x128xf32> to vector<2x32xf32>
    %54 = math.tanh %53 : vector<2x32xf32>
    %55 = arith.mulf %51, %18 : vector<2x32xf32>
    %56 = arith.mulf %50, %54 : vector<2x32xf32>
    %57 = arith.addf %55, %56 : vector<2x32xf32>
    %58 = math.tanh %57 : vector<2x32xf32>
    %59 = arith.mulf %52, %58 : vector<2x32xf32>
    %60 = vector.extract_strided_slice %11 {offsets = [1, 0, 0], sizes = [1, 2, 128], strides = [1, 1, 1]} : vector<8x2x128xf32> to vector<1x2x128xf32>
    %61 = vector.shape_cast %60 : vector<1x2x128xf32> to vector<2x128xf32>
    %cst_23 = arith.constant dense<0.000000e+00> : vector<2x128xf32>
    %62 = tpu.matmul %39, %2, %cst_23 {dimension_numbers = #tpu.dot_dimension_numbers<[1], [0], [0], [1], [0, 0, 1, 1], [], []>} : vector<2x32xf32>, vector<32x128xf32>, vector<2x128xf32> -> vector<2x128xf32>
    %63 = arith.addf %61, %62 : vector<2x128xf32>
    %cst_24 = arith.constant 5.000000e-01 : f32
    %64 = vector.broadcast %cst_24 : f32 to vector<2x128xf32>
    %65 = arith.mulf %64, %63 : vector<2x128xf32>
    %66 = math.tanh %65 : vector<2x128xf32>
    %cst_25 = arith.constant 5.000000e-01 : f32
    %67 = vector.broadcast %cst_25 : f32 to vector<2x128xf32>
    %68 = arith.mulf %67, %66 : vector<2x128xf32>
    %cst_26 = arith.constant 5.000000e-01 : f32
    %69 = vector.broadcast %cst_26 : f32 to vector<2x128xf32>
    %70 = arith.addf %68, %69 : vector<2x128xf32>
    %71 = vector.extract_strided_slice %70 {offsets = [0, 0], sizes = [2, 32], strides = [1, 1]} : vector<2x128xf32> to vector<2x32xf32>
    %72 = vector.extract_strided_slice %70 {offsets = [0, 32], sizes = [2, 32], strides = [1, 1]} : vector<2x128xf32> to vector<2x32xf32>
    %73 = vector.extract_strided_slice %70 {offsets = [0, 96], sizes = [2, 32], strides = [1, 1]} : vector<2x128xf32> to vector<2x32xf32>
    %74 = vector.extract_strided_slice %63 {offsets = [0, 64], sizes = [2, 32], strides = [1, 1]} : vector<2x128xf32> to vector<2x32xf32>
    %75 = math.tanh %74 : vector<2x32xf32>
    %76 = arith.mulf %72, %37 : vector<2x32xf32>
    %77 = arith.mulf %71, %75 : vector<2x32xf32>
    %78 = arith.addf %76, %77 : vector<2x32xf32>
    %79 = math.tanh %78 : vector<2x32xf32>
    %80 = arith.mulf %73, %79 : vector<2x32xf32>
    %81 = tpu.concatenate %80, %59 in 1 : vector<2x32xf32>, vector<2x32xf32> -> vector<2x64xf32>
    %cst_27 = arith.constant dense<0.000000e+00> : vector<2x128xf32>
    %82 = tpu.matmul %81, %4, %cst_27 {dimension_numbers = #tpu.dot_dimension_numbers<[1], [0], [0], [1], [0, 0, 1, 1], [], []>} : vector<2x64xf32>, vector<64x128xf32>, vector<2x128xf32> -> vector<2x128xf32>
    %83 = arith.addf %82, %14 : vector<2x128xf32>
    %cst_28 = arith.constant 5.000000e-01 : f32
    %84 = vector.broadcast %cst_28 : f32 to vector<2x128xf32>
    %85 = arith.mulf %84, %83 : vector<2x128xf32>
    %86 = math.tanh %85 : vector<2x128xf32>
    %cst_29 = arith.constant 5.000000e-01 : f32
    %87 = vector.broadcast %cst_29 : f32 to vector<2x128xf32>
    %88 = arith.mulf %87, %86 : vector<2x128xf32>
    %cst_30 = arith.constant 5.000000e-01 : f32
    %89 = vector.broadcast %cst_30 : f32 to vector<2x128xf32>
    %90 = arith.addf %88, %89 : vector<2x128xf32>
    %91 = vector.extract_strided_slice %90 {offsets = [0, 0], sizes = [2, 32], strides = [1, 1]} : vector<2x128xf32> to vector<2x32xf32>
    %92 = vector.extract_strided_slice %90 {offsets = [0, 32], sizes = [2, 32], strides = [1, 1]} : vector<2x128xf32> to vector<2x32xf32>
    %93 = vector.extract_strided_slice %90 {offsets = [0, 96], sizes = [2, 32], strides = [1, 1]} : vector<2x128xf32> to vector<2x32xf32>
    %94 = vector.extract_strided_slice %83 {offsets = [0, 64], sizes = [2, 32], strides = [1, 1]} : vector<2x128xf32> to vector<2x32xf32>
    %95 = math.tanh %94 : vector<2x32xf32>
    %96 = arith.mulf %92, %57 : vector<2x32xf32>
    %97 = arith.mulf %91, %95 : vector<2x32xf32>
    %98 = arith.addf %96, %97 : vector<2x32xf32>
    %99 = math.tanh %98 : vector<2x32xf32>
    %100 = arith.mulf %93, %99 : vector<2x32xf32>
    %101 = vector.extract_strided_slice %11 {offsets = [2, 0, 0], sizes = [1, 2, 128], strides = [1, 1, 1]} : vector<8x2x128xf32> to vector<1x2x128xf32>
    %102 = vector.shape_cast %101 : vector<1x2x128xf32> to vector<2x128xf32>
    %cst_31 = arith.constant dense<0.000000e+00> : vector<2x128xf32>
    %103 = tpu.matmul %80, %2, %cst_31 {dimension_numbers = #tpu.dot_dimension_numbers<[1], [0], [0], [1], [0, 0, 1, 1], [], []>} : vector<2x32xf32>, vector<32x128xf32>, vector<2x128xf32> -> vector<2x128xf32>
    %104 = arith.addf %102, %103 : vector<2x128xf32>
    %cst_32 = arith.constant 5.000000e-01 : f32
    %105 = vector.broadcast %cst_32 : f32 to vector<2x128xf32>
    %106 = arith.mulf %105, %104 : vector<2x128xf32>
    %107 = math.tanh %106 : vector<2x128xf32>
    %cst_33 = arith.constant 5.000000e-01 : f32
    %108 = vector.broadcast %cst_33 : f32 to vector<2x128xf32>
    %109 = arith.mulf %108, %107 : vector<2x128xf32>
    %cst_34 = arith.constant 5.000000e-01 : f32
    %110 = vector.broadcast %cst_34 : f32 to vector<2x128xf32>
    %111 = arith.addf %109, %110 : vector<2x128xf32>
    %112 = vector.extract_strided_slice %111 {offsets = [0, 0], sizes = [2, 32], strides = [1, 1]} : vector<2x128xf32> to vector<2x32xf32>
    %113 = vector.extract_strided_slice %111 {offsets = [0, 32], sizes = [2, 32], strides = [1, 1]} : vector<2x128xf32> to vector<2x32xf32>
    %114 = vector.extract_strided_slice %111 {offsets = [0, 96], sizes = [2, 32], strides = [1, 1]} : vector<2x128xf32> to vector<2x32xf32>
    %115 = vector.extract_strided_slice %104 {offsets = [0, 64], sizes = [2, 32], strides = [1, 1]} : vector<2x128xf32> to vector<2x32xf32>
    %116 = math.tanh %115 : vector<2x32xf32>
    %117 = arith.mulf %113, %78 : vector<2x32xf32>
    %118 = arith.mulf %112, %116 : vector<2x32xf32>
    %119 = arith.addf %117, %118 : vector<2x32xf32>
    %120 = math.tanh %119 : vector<2x32xf32>
    %121 = arith.mulf %114, %120 : vector<2x32xf32>
    %122 = tpu.concatenate %121, %100 in 1 : vector<2x32xf32>, vector<2x32xf32> -> vector<2x64xf32>
    %cst_35 = arith.constant dense<0.000000e+00> : vector<2x128xf32>
    %123 = tpu.matmul %122, %4, %cst_35 {dimension_numbers = #tpu.dot_dimension_numbers<[1], [0], [0], [1], [0, 0, 1, 1], [], []>} : vector<2x64xf32>, vector<64x128xf32>, vector<2x128xf32> -> vector<2x128xf32>
    %124 = arith.addf %123, %14 : vector<2x128xf32>
    %cst_36 = arith.constant 5.000000e-01 : f32
    %125 = vector.broadcast %cst_36 : f32 to vector<2x128xf32>
    %126 = arith.mulf %125, %124 : vector<2x128xf32>
    %127 = math.tanh %126 : vector<2x128xf32>
    %cst_37 = arith.constant 5.000000e-01 : f32
    %128 = vector.broadcast %cst_37 : f32 to vector<2x128xf32>
    %129 = arith.mulf %128, %127 : vector<2x128xf32>
    %cst_38 = arith.constant 5.000000e-01 : f32
    %130 = vector.broadcast %cst_38 : f32 to vector<2x128xf32>
    %131 = arith.addf %129, %130 : vector<2x128xf32>
    %132 = vector.extract_strided_slice %131 {offsets = [0, 0], sizes = [2, 32], strides = [1, 1]} : vector<2x128xf32> to vector<2x32xf32>
    %133 = vector.extract_strided_slice %131 {offsets = [0, 32], sizes = [2, 32], strides = [1, 1]} : vector<2x128xf32> to vector<2x32xf32>
    %134 = vector.extract_strided_slice %131 {offsets = [0, 96], sizes = [2, 32], strides = [1, 1]} : vector<2x128xf32> to vector<2x32xf32>
    %135 = vector.extract_strided_slice %124 {offsets = [0, 64], sizes = [2, 32], strides = [1, 1]} : vector<2x128xf32> to vector<2x32xf32>
    %136 = math.tanh %135 : vector<2x32xf32>
    %137 = arith.mulf %133, %98 : vector<2x32xf32>
    %138 = arith.mulf %132, %136 : vector<2x32xf32>
    %139 = arith.addf %137, %138 : vector<2x32xf32>
    %140 = math.tanh %139 : vector<2x32xf32>
    %141 = arith.mulf %134, %140 : vector<2x32xf32>
    %142 = vector.extract_strided_slice %11 {offsets = [3, 0, 0], sizes = [1, 2, 128], strides = [1, 1, 1]} : vector<8x2x128xf32> to vector<1x2x128xf32>
    %143 = vector.shape_cast %142 : vector<1x2x128xf32> to vector<2x128xf32>
    %cst_39 = arith.constant dense<0.000000e+00> : vector<2x128xf32>
    %144 = tpu.matmul %121, %2, %cst_39 {dimension_numbers = #tpu.dot_dimension_numbers<[1], [0], [0], [1], [0, 0, 1, 1], [], []>} : vector<2x32xf32>, vector<32x128xf32>, vector<2x128xf32> -> vector<2x128xf32>
    %145 = arith.addf %143, %144 : vector<2x128xf32>
    %cst_40 = arith.constant 5.000000e-01 : f32
    %146 = vector.broadcast %cst_40 : f32 to vector<2x128xf32>
    %147 = arith.mulf %146, %145 : vector<2x128xf32>
    %148 = math.tanh %147 : vector<2x128xf32>
    %cst_41 = arith.constant 5.000000e-01 : f32
    %149 = vector.broadcast %cst_41 : f32 to vector<2x128xf32>
    %150 = arith.mulf %149, %148 : vector<2x128xf32>
    %cst_42 = arith.constant 5.000000e-01 : f32
    %151 = vector.broadcast %cst_42 : f32 to vector<2x128xf32>
    %152 = arith.addf %150, %151 : vector<2x128xf32>
    %153 = vector.extract_strided_slice %152 {offsets = [0, 0], sizes = [2, 32], strides = [1, 1]} : vector<2x128xf32> to vector<2x32xf32>
    %154 = vector.extract_strided_slice %152 {offsets = [0, 32], sizes = [2, 32], strides = [1, 1]} : vector<2x128xf32> to vector<2x32xf32>
    %155 = vector.extract_strided_slice %152 {offsets = [0, 96], sizes = [2, 32], strides = [1, 1]} : vector<2x128xf32> to vector<2x32xf32>
    %156 = vector.extract_strided_slice %145 {offsets = [0, 64], sizes = [2, 32], strides = [1, 1]} : vector<2x128xf32> to vector<2x32xf32>
    %157 = math.tanh %156 : vector<2x32xf32>
    %158 = arith.mulf %154, %119 : vector<2x32xf32>
    %159 = arith.mulf %153, %157 : vector<2x32xf32>
    %160 = arith.addf %158, %159 : vector<2x32xf32>
    %161 = math.tanh %160 : vector<2x32xf32>
    %162 = arith.mulf %155, %161 : vector<2x32xf32>
    %163 = tpu.concatenate %162, %141 in 1 : vector<2x32xf32>, vector<2x32xf32> -> vector<2x64xf32>
    %cst_43 = arith.constant dense<0.000000e+00> : vector<2x128xf32>
    %164 = tpu.matmul %163, %4, %cst_43 {dimension_numbers = #tpu.dot_dimension_numbers<[1], [0], [0], [1], [0, 0, 1, 1], [], []>} : vector<2x64xf32>, vector<64x128xf32>, vector<2x128xf32> -> vector<2x128xf32>
    %165 = arith.addf %164, %14 : vector<2x128xf32>
    %cst_44 = arith.constant 5.000000e-01 : f32
    %166 = vector.broadcast %cst_44 : f32 to vector<2x128xf32>
    %167 = arith.mulf %166, %165 : vector<2x128xf32>
    %168 = math.tanh %167 : vector<2x128xf32>
    %cst_45 = arith.constant 5.000000e-01 : f32
    %169 = vector.broadcast %cst_45 : f32 to vector<2x128xf32>
    %170 = arith.mulf %169, %168 : vector<2x128xf32>
    %cst_46 = arith.constant 5.000000e-01 : f32
    %171 = vector.broadcast %cst_46 : f32 to vector<2x128xf32>
    %172 = arith.addf %170, %171 : vector<2x128xf32>
    %173 = vector.extract_strided_slice %172 {offsets = [0, 0], sizes = [2, 32], strides = [1, 1]} : vector<2x128xf32> to vector<2x32xf32>
    %174 = vector.extract_strided_slice %172 {offsets = [0, 32], sizes = [2, 32], strides = [1, 1]} : vector<2x128xf32> to vector<2x32xf32>
    %175 = vector.extract_strided_slice %172 {offsets = [0, 96], sizes = [2, 32], strides = [1, 1]} : vector<2x128xf32> to vector<2x32xf32>
    %176 = vector.extract_strided_slice %165 {offsets = [0, 64], sizes = [2, 32], strides = [1, 1]} : vector<2x128xf32> to vector<2x32xf32>
    %177 = math.tanh %176 : vector<2x32xf32>
    %178 = arith.mulf %174, %139 : vector<2x32xf32>
    %179 = arith.mulf %173, %177 : vector<2x32xf32>
    %180 = arith.addf %178, %179 : vector<2x32xf32>
    %181 = math.tanh %180 : vector<2x32xf32>
    %182 = arith.mulf %175, %181 : vector<2x32xf32>
    %183 = vector.extract_strided_slice %11 {offsets = [4, 0, 0], sizes = [1, 2, 128], strides = [1, 1, 1]} : vector<8x2x128xf32> to vector<1x2x128xf32>
    %184 = vector.shape_cast %183 : vector<1x2x128xf32> to vector<2x128xf32>
    %cst_47 = arith.constant dense<0.000000e+00> : vector<2x128xf32>
    %185 = tpu.matmul %162, %2, %cst_47 {dimension_numbers = #tpu.dot_dimension_numbers<[1], [0], [0], [1], [0, 0, 1, 1], [], []>} : vector<2x32xf32>, vector<32x128xf32>, vector<2x128xf32> -> vector<2x128xf32>
    %186 = arith.addf %184, %185 : vector<2x128xf32>
    %cst_48 = arith.constant 5.000000e-01 : f32
    %187 = vector.broadcast %cst_48 : f32 to vector<2x128xf32>
    %188 = arith.mulf %187, %186 : vector<2x128xf32>
    %189 = math.tanh %188 : vector<2x128xf32>
    %cst_49 = arith.constant 5.000000e-01 : f32
    %190 = vector.broadcast %cst_49 : f32 to vector<2x128xf32>
    %191 = arith.mulf %190, %189 : vector<2x128xf32>
    %cst_50 = arith.constant 5.000000e-01 : f32
    %192 = vector.broadcast %cst_50 : f32 to vector<2x128xf32>
    %193 = arith.addf %191, %192 : vector<2x128xf32>
    %194 = vector.extract_strided_slice %193 {offsets = [0, 0], sizes = [2, 32], strides = [1, 1]} : vector<2x128xf32> to vector<2x32xf32>
    %195 = vector.extract_strided_slice %193 {offsets = [0, 32], sizes = [2, 32], strides = [1, 1]} : vector<2x128xf32> to vector<2x32xf32>
    %196 = vector.extract_strided_slice %193 {offsets = [0, 96], sizes = [2, 32], strides = [1, 1]} : vector<2x128xf32> to vector<2x32xf32>
    %197 = vector.extract_strided_slice %186 {offsets = [0, 64], sizes = [2, 32], strides = [1, 1]} : vector<2x128xf32> to vector<2x32xf32>
    %198 = math.tanh %197 : vector<2x32xf32>
    %199 = arith.mulf %195, %160 : vector<2x32xf32>
    %200 = arith.mulf %194, %198 : vector<2x32xf32>
    %201 = arith.addf %199, %200 : vector<2x32xf32>
    %202 = math.tanh %201 : vector<2x32xf32>
    %203 = arith.mulf %196, %202 : vector<2x32xf32>
    %204 = tpu.concatenate %203, %182 in 1 : vector<2x32xf32>, vector<2x32xf32> -> vector<2x64xf32>
    %cst_51 = arith.constant dense<0.000000e+00> : vector<2x128xf32>
    %205 = tpu.matmul %204, %4, %cst_51 {dimension_numbers = #tpu.dot_dimension_numbers<[1], [0], [0], [1], [0, 0, 1, 1], [], []>} : vector<2x64xf32>, vector<64x128xf32>, vector<2x128xf32> -> vector<2x128xf32>
    %206 = arith.addf %205, %14 : vector<2x128xf32>
    %cst_52 = arith.constant 5.000000e-01 : f32
    %207 = vector.broadcast %cst_52 : f32 to vector<2x128xf32>
    %208 = arith.mulf %207, %206 : vector<2x128xf32>
    %209 = math.tanh %208 : vector<2x128xf32>
    %cst_53 = arith.constant 5.000000e-01 : f32
    %210 = vector.broadcast %cst_53 : f32 to vector<2x128xf32>
    %211 = arith.mulf %210, %209 : vector<2x128xf32>
    %cst_54 = arith.constant 5.000000e-01 : f32
    %212 = vector.broadcast %cst_54 : f32 to vector<2x128xf32>
    %213 = arith.addf %211, %212 : vector<2x128xf32>
    %214 = vector.extract_strided_slice %213 {offsets = [0, 0], sizes = [2, 32], strides = [1, 1]} : vector<2x128xf32> to vector<2x32xf32>
    %215 = vector.extract_strided_slice %213 {offsets = [0, 32], sizes = [2, 32], strides = [1, 1]} : vector<2x128xf32> to vector<2x32xf32>
    %216 = vector.extract_strided_slice %213 {offsets = [0, 96], sizes = [2, 32], strides = [1, 1]} : vector<2x128xf32> to vector<2x32xf32>
    %217 = vector.extract_strided_slice %206 {offsets = [0, 64], sizes = [2, 32], strides = [1, 1]} : vector<2x128xf32> to vector<2x32xf32>
    %218 = math.tanh %217 : vector<2x32xf32>
    %219 = arith.mulf %215, %180 : vector<2x32xf32>
    %220 = arith.mulf %214, %218 : vector<2x32xf32>
    %221 = arith.addf %219, %220 : vector<2x32xf32>
    %222 = math.tanh %221 : vector<2x32xf32>
    %223 = arith.mulf %216, %222 : vector<2x32xf32>
    %224 = vector.extract_strided_slice %11 {offsets = [5, 0, 0], sizes = [1, 2, 128], strides = [1, 1, 1]} : vector<8x2x128xf32> to vector<1x2x128xf32>
    %225 = vector.shape_cast %224 : vector<1x2x128xf32> to vector<2x128xf32>
    %cst_55 = arith.constant dense<0.000000e+00> : vector<2x128xf32>
    %226 = tpu.matmul %203, %2, %cst_55 {dimension_numbers = #tpu.dot_dimension_numbers<[1], [0], [0], [1], [0, 0, 1, 1], [], []>} : vector<2x32xf32>, vector<32x128xf32>, vector<2x128xf32> -> vector<2x128xf32>
    %227 = arith.addf %225, %226 : vector<2x128xf32>
    %cst_56 = arith.constant 5.000000e-01 : f32
    %228 = vector.broadcast %cst_56 : f32 to vector<2x128xf32>
    %229 = arith.mulf %228, %227 : vector<2x128xf32>
    %230 = math.tanh %229 : vector<2x128xf32>
    %cst_57 = arith.constant 5.000000e-01 : f32
    %231 = vector.broadcast %cst_57 : f32 to vector<2x128xf32>
    %232 = arith.mulf %231, %230 : vector<2x128xf32>
    %cst_58 = arith.constant 5.000000e-01 : f32
    %233 = vector.broadcast %cst_58 : f32 to vector<2x128xf32>
    %234 = arith.addf %232, %233 : vector<2x128xf32>
    %235 = vector.extract_strided_slice %234 {offsets = [0, 0], sizes = [2, 32], strides = [1, 1]} : vector<2x128xf32> to vector<2x32xf32>
    %236 = vector.extract_strided_slice %234 {offsets = [0, 32], sizes = [2, 32], strides = [1, 1]} : vector<2x128xf32> to vector<2x32xf32>
    %237 = vector.extract_strided_slice %234 {offsets = [0, 96], sizes = [2, 32], strides = [1, 1]} : vector<2x128xf32> to vector<2x32xf32>
    %238 = vector.extract_strided_slice %227 {offsets = [0, 64], sizes = [2, 32], strides = [1, 1]} : vector<2x128xf32> to vector<2x32xf32>
    %239 = math.tanh %238 : vector<2x32xf32>
    %240 = arith.mulf %236, %201 : vector<2x32xf32>
    %241 = arith.mulf %235, %239 : vector<2x32xf32>
    %242 = arith.addf %240, %241 : vector<2x32xf32>
    %243 = math.tanh %242 : vector<2x32xf32>
    %244 = arith.mulf %237, %243 : vector<2x32xf32>
    %245 = tpu.concatenate %244, %223 in 1 : vector<2x32xf32>, vector<2x32xf32> -> vector<2x64xf32>
    %cst_59 = arith.constant dense<0.000000e+00> : vector<2x128xf32>
    %246 = tpu.matmul %245, %4, %cst_59 {dimension_numbers = #tpu.dot_dimension_numbers<[1], [0], [0], [1], [0, 0, 1, 1], [], []>} : vector<2x64xf32>, vector<64x128xf32>, vector<2x128xf32> -> vector<2x128xf32>
    %247 = arith.addf %246, %14 : vector<2x128xf32>
    %cst_60 = arith.constant 5.000000e-01 : f32
    %248 = vector.broadcast %cst_60 : f32 to vector<2x128xf32>
    %249 = arith.mulf %248, %247 : vector<2x128xf32>
    %250 = math.tanh %249 : vector<2x128xf32>
    %cst_61 = arith.constant 5.000000e-01 : f32
    %251 = vector.broadcast %cst_61 : f32 to vector<2x128xf32>
    %252 = arith.mulf %251, %250 : vector<2x128xf32>
    %cst_62 = arith.constant 5.000000e-01 : f32
    %253 = vector.broadcast %cst_62 : f32 to vector<2x128xf32>
    %254 = arith.addf %252, %253 : vector<2x128xf32>
    %255 = vector.extract_strided_slice %254 {offsets = [0, 0], sizes = [2, 32], strides = [1, 1]} : vector<2x128xf32> to vector<2x32xf32>
    %256 = vector.extract_strided_slice %254 {offsets = [0, 32], sizes = [2, 32], strides = [1, 1]} : vector<2x128xf32> to vector<2x32xf32>
    %257 = vector.extract_strided_slice %254 {offsets = [0, 96], sizes = [2, 32], strides = [1, 1]} : vector<2x128xf32> to vector<2x32xf32>
    %258 = vector.extract_strided_slice %247 {offsets = [0, 64], sizes = [2, 32], strides = [1, 1]} : vector<2x128xf32> to vector<2x32xf32>
    %259 = math.tanh %258 : vector<2x32xf32>
    %260 = arith.mulf %256, %221 : vector<2x32xf32>
    %261 = arith.mulf %255, %259 : vector<2x32xf32>
    %262 = arith.addf %260, %261 : vector<2x32xf32>
    %263 = math.tanh %262 : vector<2x32xf32>
    %264 = arith.mulf %257, %263 : vector<2x32xf32>
    %265 = vector.extract_strided_slice %11 {offsets = [6, 0, 0], sizes = [1, 2, 128], strides = [1, 1, 1]} : vector<8x2x128xf32> to vector<1x2x128xf32>
    %266 = vector.shape_cast %265 : vector<1x2x128xf32> to vector<2x128xf32>
    %cst_63 = arith.constant dense<0.000000e+00> : vector<2x128xf32>
    %267 = tpu.matmul %244, %2, %cst_63 {dimension_numbers = #tpu.dot_dimension_numbers<[1], [0], [0], [1], [0, 0, 1, 1], [], []>} : vector<2x32xf32>, vector<32x128xf32>, vector<2x128xf32> -> vector<2x128xf32>
    %268 = arith.addf %266, %267 : vector<2x128xf32>
    %cst_64 = arith.constant 5.000000e-01 : f32
    %269 = vector.broadcast %cst_64 : f32 to vector<2x128xf32>
    %270 = arith.mulf %269, %268 : vector<2x128xf32>
    %271 = math.tanh %270 : vector<2x128xf32>
    %cst_65 = arith.constant 5.000000e-01 : f32
    %272 = vector.broadcast %cst_65 : f32 to vector<2x128xf32>
    %273 = arith.mulf %272, %271 : vector<2x128xf32>
    %cst_66 = arith.constant 5.000000e-01 : f32
    %274 = vector.broadcast %cst_66 : f32 to vector<2x128xf32>
    %275 = arith.addf %273, %274 : vector<2x128xf32>
    %276 = vector.extract_strided_slice %275 {offsets = [0, 0], sizes = [2, 32], strides = [1, 1]} : vector<2x128xf32> to vector<2x32xf32>
    %277 = vector.extract_strided_slice %275 {offsets = [0, 32], sizes = [2, 32], strides = [1, 1]} : vector<2x128xf32> to vector<2x32xf32>
    %278 = vector.extract_strided_slice %275 {offsets = [0, 96], sizes = [2, 32], strides = [1, 1]} : vector<2x128xf32> to vector<2x32xf32>
    %279 = vector.extract_strided_slice %268 {offsets = [0, 64], sizes = [2, 32], strides = [1, 1]} : vector<2x128xf32> to vector<2x32xf32>
    %280 = math.tanh %279 : vector<2x32xf32>
    %281 = arith.mulf %277, %242 : vector<2x32xf32>
    %282 = arith.mulf %276, %280 : vector<2x32xf32>
    %283 = arith.addf %281, %282 : vector<2x32xf32>
    %284 = math.tanh %283 : vector<2x32xf32>
    %285 = arith.mulf %278, %284 : vector<2x32xf32>
    %286 = tpu.concatenate %285, %264 in 1 : vector<2x32xf32>, vector<2x32xf32> -> vector<2x64xf32>
    %cst_67 = arith.constant dense<0.000000e+00> : vector<2x128xf32>
    %287 = tpu.matmul %286, %4, %cst_67 {dimension_numbers = #tpu.dot_dimension_numbers<[1], [0], [0], [1], [0, 0, 1, 1], [], []>} : vector<2x64xf32>, vector<64x128xf32>, vector<2x128xf32> -> vector<2x128xf32>
    %288 = arith.addf %287, %14 : vector<2x128xf32>
    %cst_68 = arith.constant 5.000000e-01 : f32
    %289 = vector.broadcast %cst_68 : f32 to vector<2x128xf32>
    %290 = arith.mulf %289, %288 : vector<2x128xf32>
    %291 = math.tanh %290 : vector<2x128xf32>
    %cst_69 = arith.constant 5.000000e-01 : f32
    %292 = vector.broadcast %cst_69 : f32 to vector<2x128xf32>
    %293 = arith.mulf %292, %291 : vector<2x128xf32>
    %cst_70 = arith.constant 5.000000e-01 : f32
    %294 = vector.broadcast %cst_70 : f32 to vector<2x128xf32>
    %295 = arith.addf %293, %294 : vector<2x128xf32>
    %296 = vector.extract_strided_slice %295 {offsets = [0, 0], sizes = [2, 32], strides = [1, 1]} : vector<2x128xf32> to vector<2x32xf32>
    %297 = vector.extract_strided_slice %295 {offsets = [0, 32], sizes = [2, 32], strides = [1, 1]} : vector<2x128xf32> to vector<2x32xf32>
    %298 = vector.extract_strided_slice %295 {offsets = [0, 96], sizes = [2, 32], strides = [1, 1]} : vector<2x128xf32> to vector<2x32xf32>
    %299 = vector.extract_strided_slice %288 {offsets = [0, 64], sizes = [2, 32], strides = [1, 1]} : vector<2x128xf32> to vector<2x32xf32>
    %300 = math.tanh %299 : vector<2x32xf32>
    %301 = arith.mulf %297, %262 : vector<2x32xf32>
    %302 = arith.mulf %296, %300 : vector<2x32xf32>
    %303 = arith.addf %301, %302 : vector<2x32xf32>
    %304 = math.tanh %303 : vector<2x32xf32>
    %305 = arith.mulf %298, %304 : vector<2x32xf32>
    %306 = vector.extract_strided_slice %11 {offsets = [7, 0, 0], sizes = [1, 2, 128], strides = [1, 1, 1]} : vector<8x2x128xf32> to vector<1x2x128xf32>
    %307 = vector.shape_cast %306 : vector<1x2x128xf32> to vector<2x128xf32>
    %cst_71 = arith.constant dense<0.000000e+00> : vector<2x128xf32>
    %308 = tpu.matmul %285, %2, %cst_71 {dimension_numbers = #tpu.dot_dimension_numbers<[1], [0], [0], [1], [0, 0, 1, 1], [], []>} : vector<2x32xf32>, vector<32x128xf32>, vector<2x128xf32> -> vector<2x128xf32>
    %309 = arith.addf %307, %308 : vector<2x128xf32>
    %cst_72 = arith.constant 5.000000e-01 : f32
    %310 = vector.broadcast %cst_72 : f32 to vector<2x128xf32>
    %311 = arith.mulf %310, %309 : vector<2x128xf32>
    %312 = math.tanh %311 : vector<2x128xf32>
    %cst_73 = arith.constant 5.000000e-01 : f32
    %313 = vector.broadcast %cst_73 : f32 to vector<2x128xf32>
    %314 = arith.mulf %313, %312 : vector<2x128xf32>
    %cst_74 = arith.constant 5.000000e-01 : f32
    %315 = vector.broadcast %cst_74 : f32 to vector<2x128xf32>
    %316 = arith.addf %314, %315 : vector<2x128xf32>
    %317 = vector.extract_strided_slice %316 {offsets = [0, 0], sizes = [2, 32], strides = [1, 1]} : vector<2x128xf32> to vector<2x32xf32>
    %318 = vector.extract_strided_slice %316 {offsets = [0, 32], sizes = [2, 32], strides = [1, 1]} : vector<2x128xf32> to vector<2x32xf32>
    %319 = vector.extract_strided_slice %316 {offsets = [0, 96], sizes = [2, 32], strides = [1, 1]} : vector<2x128xf32> to vector<2x32xf32>
    %320 = vector.extract_strided_slice %309 {offsets = [0, 64], sizes = [2, 32], strides = [1, 1]} : vector<2x128xf32> to vector<2x32xf32>
    %321 = math.tanh %320 : vector<2x32xf32>
    %322 = arith.mulf %318, %283 : vector<2x32xf32>
    %323 = arith.mulf %317, %321 : vector<2x32xf32>
    %324 = arith.addf %322, %323 : vector<2x32xf32>
    %325 = math.tanh %324 : vector<2x32xf32>
    %326 = arith.mulf %319, %325 : vector<2x32xf32>
    %327 = tpu.concatenate %326, %305 in 1 : vector<2x32xf32>, vector<2x32xf32> -> vector<2x64xf32>
    %cst_75 = arith.constant dense<0.000000e+00> : vector<2x128xf32>
    %328 = tpu.matmul %327, %4, %cst_75 {dimension_numbers = #tpu.dot_dimension_numbers<[1], [0], [0], [1], [0, 0, 1, 1], [], []>} : vector<2x64xf32>, vector<64x128xf32>, vector<2x128xf32> -> vector<2x128xf32>
    %329 = arith.addf %328, %14 : vector<2x128xf32>
    %cst_76 = arith.constant 5.000000e-01 : f32
    %330 = vector.broadcast %cst_76 : f32 to vector<2x128xf32>
    %331 = arith.mulf %330, %329 : vector<2x128xf32>
    %332 = math.tanh %331 : vector<2x128xf32>
    %cst_77 = arith.constant 5.000000e-01 : f32
    %333 = vector.broadcast %cst_77 : f32 to vector<2x128xf32>
    %334 = arith.mulf %333, %332 : vector<2x128xf32>
    %cst_78 = arith.constant 5.000000e-01 : f32
    %335 = vector.broadcast %cst_78 : f32 to vector<2x128xf32>
    %336 = arith.addf %334, %335 : vector<2x128xf32>
    %337 = vector.extract_strided_slice %336 {offsets = [0, 0], sizes = [2, 32], strides = [1, 1]} : vector<2x128xf32> to vector<2x32xf32>
    %338 = vector.extract_strided_slice %336 {offsets = [0, 32], sizes = [2, 32], strides = [1, 1]} : vector<2x128xf32> to vector<2x32xf32>
    %339 = vector.extract_strided_slice %336 {offsets = [0, 96], sizes = [2, 32], strides = [1, 1]} : vector<2x128xf32> to vector<2x32xf32>
    %340 = vector.extract_strided_slice %329 {offsets = [0, 64], sizes = [2, 32], strides = [1, 1]} : vector<2x128xf32> to vector<2x32xf32>
    %341 = math.tanh %340 : vector<2x32xf32>
    %342 = arith.mulf %338, %303 : vector<2x32xf32>
    %343 = arith.mulf %337, %341 : vector<2x32xf32>
    %344 = arith.addf %342, %343 : vector<2x32xf32>
    %345 = math.tanh %344 : vector<2x32xf32>
    %346 = arith.mulf %339, %345 : vector<2x32xf32>
    %c0_79 = arith.constant 0 : index
    %c0_80 = arith.constant 0 : index
    %347 = vector.load %arg6[%c0_79, %c0_80] : memref<32x1xf32, #tpu.memory_space<vmem>>, vector<32x1xf32>
    %cst_81 = arith.constant dense<0.000000e+00> : vector<2x1xf32>
    %348 = tpu.matmul %346, %347, %cst_81 {dimension_numbers = #tpu.dot_dimension_numbers<[1], [0], [0], [1], [0, 0, 1, 1], [], []>} : vector<2x32xf32>, vector<32x1xf32>, vector<2x1xf32> -> vector<2x1xf32>
    %c0_82 = arith.constant 0 : index
    %c0_83 = arith.constant 0 : index
    %349 = vector.load %arg7[%c0_82, %c0_83] : memref<1x1xf32, #tpu.memory_space<vmem>>, vector<1x1xf32>
    %350 = vector.broadcast %349 : vector<1x1xf32> to vector<2x1xf32>
    %351 = arith.addf %348, %350 : vector<2x1xf32>
    %c0_84 = arith.constant 0 : index
    %c0_85 = arith.constant 0 : index
    %352 = vector.load %arg8[%c0_84, %c0_85] : memref<2x1xf32, #tpu.memory_space<vmem>>, vector<2x1xf32>
    tpu.vector_store %arg8[%c0_84, %c0_85], %351 {strides = array<i32>} : memref<2x1xf32, #tpu.memory_space<vmem>>, vector<2x1xf32>,
    return
  }
}

</mosaic_0001>

<bundles_post_ra>
// kernel: tpu_custom_call.1
= control target key start
LH: loop header
LB: loop body
LE: loop exit
PB: predicated region body
PF: predicated region fallthrough
CT: control target
= control target key end

     0   :  { %s2951_s0 = inlined_call_operand.vmem [shape: f32[8,2,1], index: 0, kind: input, shape index: {}]   ;;  %s2952_s1 = inlined_call_operand.vmem [shape: f32[1,128], index: 1, kind: input, shape index: {}]   ;;  %s2953_s2 = inlined_call_operand.hbm [shape: f32[32,128], index: 2, kind: input, shape index: {}]   ;;  %s2954_s3 = inlined_call_operand.vmem [shape: f32[1,128], index: 3, kind: input, shape index: {}]   ;;  %s2955_s4 = inlined_call_operand.vmem [shape: f32[64,128], index: 4, kind: input, shape index: {}]   ;;  %s2956_s5 = inlined_call_operand.vmem [shape: f32[1,128], index: 5, kind: input, shape index: {}]   ;;  %s2957_s6 = inlined_call_operand.vmem [shape: f32[32,1], index: 6, kind: input, shape index: {}]   ;;  %s2958_s7 = inlined_call_operand.<no memory space> [shape: f32[1,1], index: 7, kind: input, shape index: {}]   ;;  %s2959_s8 = inlined_call_operand.vmem [shape: f32[2,1], index: 8, kind: output, shape index: {}]  }
   0x1   :  { %v13_v0 = vstv %s2958_s7 }
   0x2   :  { %14 = vst [vmem:[#allocation2] sm:$0x1] %v13_v0 }
   0x3   :  { %15 = vsyncpa [#allocation4], 0  ;;  %s2495_s29 = smov [#allocation3]   ;;  %s2471_s11 = scalar_lea.hbm %s2953_s2, 512 }
   0x4   :  { %s25_s30 = sshll.u32 %s2495_s29, 4  ;;  %p2472_p0 = scmp.ne.s32.totalorder %s2953_s2, %s2471_s11  ;;  %s26_s30 = int_to_ptr.vmem [resolvable:$true] %s25_s30 }
   0x5   :  { %p2475_p1 = scmp.lt.u32.totalorder %s2471_s11, %s2953_s2 }
   0x7   :  { %p2477_p2 = pnand %p2475_p1, %p2472_p0 }
   0x9   :  { %2480 = shalt.err (!%p2477_p2)
}
   0xa   :  { %s2481_s7 = scalar_lea.vmem %s26_s30, 512  ;;  %p2486_p4 = scmp.lt.s32.totalorder %s26_s30, %s26_s30 }
   0xb   :  { %p2482_p3 = scmp.ne.s32.totalorder %s26_s30, %s2481_s7  ;;  %p2487_p5 = scmp.lt.s32.totalorder %s2481_s7, %s2481_s7 }
   0xd   :  { %p2488_p6 = por %p2487_p5, %p2486_p4 }
   0xf   :  { %p2489_p7 = pnand %p2488_p6, %p2482_p3 }
  0x11   :  { %2492 = shalt.err (!%p2489_p7)
}
  0x12   :  { %s2496_s16 = smov 128   ;;  %s2497_s17 = smov 8  }
  0x13   :  { %31 = dma.hbm_to_vmem [thread:$0]  %s2953_s2, 512, %s26_s30, [#allocation4], %s2496_s16, %s2496_s16, %s2497_s17  }
  0x14   :  { %2493 = dma.done.wait [#allocation4], 512  }
  0x15   :  { %2494 = vsyncadd [#allocation4], 4294966784  ;;  %v2498_v1 = vmov 0.0|0.0   ;;  %vm2499_vm0 = vmmov 0   ;;  %v2500_v2 = vmov 0.0   ;;  %v2501_v3 = vmov 0  }
  0x16   :  { %2214 = vmatprep.subr.bf16.mxu0 %v2498_v1  ;;  %1971 = vmatprep.mubr.msk.f32.mxu0 %vm2499_vm0, %v2500_v2  ;;  %v54_v4 = vld [vmem:[#allocation3] sm:$0xff]  ;;  %v55_v5 = vld [vmem:[#allocation3 + $0x8] sm:$0xff]  ;;  %v56_v6 = vld [vmem:[#allocation3 + $0x10] sm:$0xff]  ;;  %s2502_s25 = smov 64   ;;  %vm142_vm1 = vcmask 261120   ;;  %vm244_vm2 = vcmask 523264  }
  0x17   :  { %2373 = vset.pattern.permute.xlu0 %v2501_v3  ;;  %2220 = vmatprep.subr.bf16.mxu1 %v2498_v1  ;;  %v2570_v7 = vpack.c.bf16 %v55_v5, %v54_v4  ;;  %v57_v8 = vld [vmem:[#allocation3 + $0x18] sm:$0xff]  ;;  %v60_v30 = vld [vmem:[%s2955_s4 + $0x8] sm:$0xff]  ;;  %v61_v31 = vld [vmem:[%s2955_s4 + $0x10] sm:$0xff]  ;;  %vm1819_vm3 = vcmask 1024  }
  0x18   :  { %1990 = vmatprep.mubr.msk.f32.mxu1 %vm2499_vm0, %v2500_v2  ;;  %2374 = vset.pattern.permute.xlu1 %v2501_v3  ;;  %v45_v9 = vld [vmem:[%s2951_s0] sm:$0x3]  ;;  %v2576_v10 = vpack.c.bf16 %v57_v8, %v56_v6  ;;  %v62_v33 = vld [vmem:[%s2955_s4 + $0x18] sm:$0xff]  ;;  %v64_v36 = vld [vmem:[%s2955_s4 + $0x28] sm:$0xff] }
  0x19   :  { %69 = vperm.xlu0 %2373, %v45_v9   ;;  %2216 = vmatpush3.bf16.msra.mxu0 %v2570_v7  ;;  %v2591_v11 = vld [vmem:[%s2952_s1] ss:$0 sm:$0xff]  ;;  %s2503_s1 = smov 32   ;;  %v2620_v34 = vpack.c.bf16 %v62_v33, %v61_v31  ;;  %v65_v38 = vld [vmem:[%s2955_s4 + $0x30] sm:$0xff]  ;;  %v66_v39 = vld [vmem:[%s2955_s4 + $0x38] sm:$0xff] }
  0x1a   :  { %2217 = vmatprep.subr.bf16.mxu0 %v2498_v1  ;;  %v2597_v14 = vld [vmem:[%s2954_s3] ss:$0 sm:$0xff]  ;;  %v2641_v41 = vpack.c.bf16 %v66_v39, %v65_v38  ;;  %v46_v42 = vld [vmem:[%s2951_s0 + $0x2] sm:$0x3] }
  0x1b   :  { %v59_v29 = vld [vmem:[%s2955_s4] sm:$0xff] }
  0x1c   :  { %v2614_v32 = vpack.c.bf16 %v60_v30, %v59_v29  ;;  %v63_v35 = vld [vmem:[%s2955_s4 + $0x20] sm:$0xff] }
  0x1d   :  { %2219 = vmatpush3.bf16.msra.mxu0 %v2576_v10  ;;  %v2630_v37 = vpack.c.bf16 %v64_v36, %v63_v35  ;;  %v2674_v50 = vld [vmem:[%s2956_s5] ss:$0 sm:$0xff] }
  0x1e   :  { %2232 = vmatprep.subr.bf16.mxu0 %v2498_v1  ;;  %2222 = vmatpush3.bf16.msra.mxu1 %v2614_v32 }
  0x1f   :  { %2223 = vmatprep.subr.bf16.mxu1 %v2498_v1 }
  0x20   :  { %1972 = vmatmul.mubr.f32.vlgmr.msra.gmra.mrb[0].mxu0 %v2500_v2 }
  0x21   :  { %2234 = vmatpush3.bf16.msra.mxu0 %v2570_v7  ;;  %2001 = vmatprep.mubr.msk.f32.mxu0 %vm2499_vm0, %v2500_v2 }
  0x22   :  { %2235 = vmatprep.subr.bf16.mxu0 %v2498_v1  ;;  %2225 = vmatpush3.bf16.msra.mxu1 %v2620_v34 }
  0x23   :  { %2226 = vmatprep.subr.bf16.mxu1 %v2498_v1 }
  0x25   :  { %2237 = vmatpush3.bf16.msra.mxu0 %v2576_v10 }
  0x26   :  { %2238 = vmatprep.subr.bf16.mxu0 %v2498_v1  ;;  %2228 = vmatpush3.bf16.msra.mxu1 %v2630_v37 }
  0x27   :  { %2229 = vmatprep.subr.bf16.mxu1 %v2498_v1 }
  0x2a   :  { %2231 = vmatpush3.bf16.msra.mxu1 %v2641_v41 }
  0x2b   :  { %2250 = vmatprep.subr.bf16.mxu1 %v2498_v1 }
  0x98   :  { %v70_v12 = vpop.permute.xlu0 %69 }
  0x99   :  { %v113_v13 = vmul.f32 %v2591_v11, %v70_v12 }
  0x9b   :  { %v127_v15 = vadd.f32 %v2597_v14, %v113_v13 }
  0xf3   :  { %v212_v16 = vpop.f32.mrb[0].mxu0 }
  0xf4   :  { %v216_v17 = vadd.f32 %v212_v16, %v127_v15  ;;  %v1973_v18 = vpop.f32.mrb[1].mxu0 }
  0xf6   :  { %2375 = vtanh.f32 %v216_v17  ;;  %v217_v20 = vmul.f32 0.5, %v216_v17 }
  0xf8   :  { %2377 = vtanh.f32 %v217_v20 }
 0x100   :  { %v2376_v19 = vpop.eup %2375 }
 0x101   :  { %224 = vrot.lane.b32.xlu0 %v2376_v19, %s2502_s25 }
 0x102   :  { %v2378_v21 = vpop.eup %2377 }
 0x103   :  { %v219_v22 = vmul.f32 0.5, %v2378_v21 }
 0x105   :  { %v220_v23 = vadd.f32 0.5, %v219_v22 }
 0x107   :  { %v222_v26 = vmul.f32 0.0, %v220_v23 }
 0x173   :  { %v225_v24 = vpop.permute.xlu0 %224 }
 0x174   :  { %v227_v25 = vmul.f32 %v225_v24, %v220_v23 }
 0x176   :  { %229 = vrot.lane.b32.xlu1 %v227_v25, %s2503_s1  ;;  %v47_v25 = vld [vmem:[%s2951_s0 + $0x4] sm:$0x3] }
 0x1e8   :  { %v230_v27 = vpop.permute.xlu1 %229 }
 0x1e9   :  { %v2602_v28 = vadd.f32 %v230_v27, %v222_v26 }
 0x1eb   :  { %2379 = vtanh.f32 %v2602_v28 }
 0x1f5   :  { %v2380_v40 = vpop.eup %2379 }
 0x1f6   :  { %235 = vrot.lane.b32.xlu1 %v2380_v40, %s2502_s25 }
 0x1fa   :  { %74 = vperm.xlu1 %2374, %v46_v42  }
 0x268   :  { %v236_v43 = vpop.permute.xlu1 %235 }
 0x269   :  { %v238_v44 = vmul.f32 %v236_v43, %v220_v23 }
 0x26b   :  { %240 = vrot.lane.b32.xlu0 %v238_v44, %s2503_s1 }
 0x279   :  { %v75_v47 = vpop.permute.xlu1 %74 }
 0x27a   :  { %v114_v48 = vmul.f32 %v2591_v11, %v75_v47 }
 0x27c   :  { %v128_v49 = vadd.f32 %v2597_v14, %v114_v48 }
 0x2dd   :  { %v241_v45 = vpop.permute.xlu0 %240 }
 0x2de   :  { %v243_v46 = vsel %vm142_vm1, %v241_v45, 0.0  ;;  %2002 = vmatmul.mubr.msk.f32.vlgmr.msra.gmra.mrb[2].mxu0 %vm142_vm1, %v241_v45 }
 0x2df   :  { %1991 = vmatmul.mubr.msk.f32.vlgmr.msra.gmra.mrb[0].mxu1 %vm244_vm2, %v243_v46  ;;  %2240 = vmatpush3.bf16.msra.mxu0 %v2614_v32 }
 0x2e0   :  { %2241 = vmatprep.subr.bf16.mxu0 %v2498_v1  ;;  %2252 = vmatpush3.bf16.msra.mxu1 %v2570_v7 }
 0x2e1   :  { %2253 = vmatprep.subr.bf16.mxu1 %v2498_v1  ;;  %2031 = vmatprep.mubr.msk.f32.mxu1 %vm2499_vm0, %v2500_v2 }
 0x2e2   :  { %2020 = vmatprep.mubr.msk.f32.mxu0 %vm2499_vm0, %v2500_v2 }
 0x2e3   :  { %2243 = vmatpush3.bf16.msra.mxu0 %v2620_v34 }
 0x2e4   :  { %2244 = vmatprep.subr.bf16.mxu0 %v2498_v1  ;;  %2255 = vmatpush3.bf16.msra.mxu1 %v2576_v10 }
 0x2e5   :  { %2256 = vmatprep.subr.bf16.mxu1 %v2498_v1 }
 0x2e7   :  { %2246 = vmatpush3.bf16.msra.mxu0 %v2630_v37 }
 0x2e8   :  { %2247 = vmatprep.subr.bf16.mxu0 %v2498_v1 }
 0x2eb   :  { %2249 = vmatpush3.bf16.msra.mxu0 %v2641_v41 }
 0x2ec   :  { %2268 = vmatprep.subr.bf16.mxu0 %v2498_v1 }
 0x3b1   :  { %v408_v51 = vpop.f32.mrb[2].mxu0 }
 0x3b2   :  { %v412_v52 = vadd.f32 %v408_v51, %v128_v49  ;;  %v314_v53 = vpop.f32.mrb[0].mxu1  ;;  %v2003_v54 = vpop.f32.mrb[3].mxu0 }
 0x3b3   :  { %v315_v55 = vadd.f32 %v2674_v50, %v314_v53  ;;  %v1992_v56 = vpop.f32.mrb[1].mxu1 }
 0x3b4   :  { %2381 = vtanh.f32 %v412_v52  ;;  %v413_v59 = vmul.f32 0.5, %v412_v52 }
 0x3b5   :  { %2383 = vtanh.f32 %v315_v55  ;;  %v318_v60 = vmul.f32 0.5, %v315_v55 }
 0x3b6   :  { %2385 = vtanh.f32 %v413_v59 }
 0x3b7   :  { %2387 = vtanh.f32 %v318_v60 }
 0x3be   :  { %v2382_v57 = vpop.eup %2381 }
 0x3bf   :  { %v2384_v58 = vpop.eup %2383  ;;  %420 = vrot.lane.b32.xlu1 %v2382_v57, %s2502_s25 }
 0x3c0   :  { %325 = vrot.lane.b32.xlu0 %v2384_v58, %s2502_s25  ;;  %v2386_v61 = vpop.eup %2385 }
 0x3c1   :  { %v2388_v62 = vpop.eup %2387  ;;  %v415_v63 = vmul.f32 0.5, %v2386_v61 }
 0x3c2   :  { %v320_v0 = vmul.f32 0.5, %v2388_v62 }
 0x3c3   :  { %v416_v3 = vadd.f32 0.5, %v415_v63 }
 0x3c4   :  { %v321_v5 = vadd.f32 0.5, %v320_v0 }
 0x3c5   :  { %v418_v12 = vmul.f32 %v416_v3, %v2602_v28 }
 0x3c6   :  { %v323_v15 = vmul.f32 0.0, %v321_v5 }
 0x431   :  { %v421_v4 = vpop.permute.xlu1 %420 }
 0x432   :  { %v423_v6 = vmul.f32 %v421_v4, %v416_v3  ;;  %v326_v8 = vpop.permute.xlu0 %325 }
 0x433   :  { %v328_v9 = vmul.f32 %v326_v8, %v321_v5  ;;  %v48_v8 = vld [vmem:[%s2951_s0 + $0x6] sm:$0x3] }
 0x434   :  { %425 = vrot.lane.b32.xlu1 %v423_v6, %s2503_s1 }
 0x435   :  { %330 = vrot.lane.b32.xlu0 %v328_v9, %s2503_s1 }
 0x4a6   :  { %v426_v13 = vpop.permute.xlu1 %425 }
 0x4a7   :  { %v2682_v16 = vadd.f32 %v426_v13, %v418_v12  ;;  %v331_v17 = vpop.permute.xlu0 %330 }
 0x4a8   :  { %v2684_v18 = vadd.f32 %v331_v17, %v323_v15 }
 0x4a9   :  { %2389 = vtanh.f32 %v2682_v16 }
 0x4aa   :  { %2391 = vtanh.f32 %v2684_v18 }
 0x4b3   :  { %v2390_v19 = vpop.eup %2389 }
 0x4b4   :  { %v2392_v20 = vpop.eup %2391  ;;  %431 = vrot.lane.b32.xlu1 %v2390_v19, %s2502_s25 }
 0x4b5   :  { %336 = vrot.lane.b32.xlu0 %v2392_v20, %s2502_s25 }
 0x526   :  { %v432_v21 = vpop.permute.xlu1 %431 }
 0x527   :  { %v434_v22 = vmul.f32 %v432_v21, %v416_v3  ;;  %v337_v23 = vpop.permute.xlu0 %336 }
 0x528   :  { %v339_v24 = vmul.f32 %v337_v23, %v321_v5 }
 0x529   :  { %436 = vrot.lane.b32.xlu0 %v434_v22, %s2503_s1 }
 0x52a   :  { %440 = vrot.lane.b32.xlu1 %v339_v24, %s2502_s25 }
 0x52d   :  { %79 = vperm.xlu0 %2373, %v47_v25  }
 0x59b   :  { %v437_v26 = vpop.permute.xlu0 %436 }
 0x59c   :  { %2032 = vmatmul.mubr.msk.f32.vlgmr.msra.gmra.mrb[2].mxu1 %vm142_vm1, %v437_v26  ;;  %v441_v27 = vpop.permute.xlu1 %440 }
 0x59d   :  { %v443_v28 = vsel %vm142_vm1, %v437_v26, %v441_v27  ;;  %2258 = vmatpush3.bf16.msra.mxu1 %v2614_v32  ;;  %2050 = vmatprep.mubr.msk.f32.mxu1 %vm2499_vm0, %v2500_v2 }
 0x59e   :  { %2021 = vmatmul.mubr.msk.f32.vlgmr.msra.gmra.mrb[4].mxu0 %vm244_vm2, %v443_v28  ;;  %2259 = vmatprep.subr.bf16.mxu1 %v2498_v1 }
 0x59f   :  { %2270 = vmatpush3.bf16.msra.mxu0 %v2570_v7  ;;  %2061 = vmatprep.mubr.msk.f32.mxu0 %vm2499_vm0, %v2500_v2 }
 0x5a0   :  { %2271 = vmatprep.subr.bf16.mxu0 %v2498_v1 }
 0x5a1   :  { %2261 = vmatpush3.bf16.msra.mxu1 %v2620_v34 }
 0x5a2   :  { %2262 = vmatprep.subr.bf16.mxu1 %v2498_v1 }
 0x5a3   :  { %2273 = vmatpush3.bf16.msra.mxu0 %v2576_v10 }
 0x5a4   :  { %2274 = vmatprep.subr.bf16.mxu0 %v2498_v1 }
 0x5a5   :  { %2264 = vmatpush3.bf16.msra.mxu1 %v2630_v37 }
 0x5a6   :  { %2265 = vmatprep.subr.bf16.mxu1 %v2498_v1 }
 0x5a9   :  { %2267 = vmatpush3.bf16.msra.mxu1 %v2641_v41 }
 0x5aa   :  { %2286 = vmatprep.subr.bf16.mxu1 %v2498_v1 }
 0x5ac   :  { %v80_v29 = vpop.permute.xlu0 %79 }
 0x5ad   :  { %v115_v30 = vmul.f32 %v2591_v11, %v80_v29 }
 0x5af   :  { %v129_v31 = vadd.f32 %v2597_v14, %v115_v30 }
 0x66f   :  { %v607_v33 = vpop.f32.mrb[2].mxu1 }
 0x670   :  { %v611_v35 = vadd.f32 %v607_v33, %v129_v31  ;;  %v2033_v36 = vpop.f32.mrb[3].mxu1 }
 0x671   :  { %v513_v38 = vpop.f32.mrb[4].mxu0 }
 0x672   :  { %2393 = vtanh.f32 %v611_v35  ;;  %v514_v39 = vadd.f32 %v2674_v50, %v513_v38  ;;  %v2022_v40 = vpop.f32.mrb[5].mxu0  ;;  %v612_v44 = vmul.f32 0.5, %v611_v35 }
 0x674   :  { %2395 = vtanh.f32 %v514_v39  ;;  %v517_v45 = vmul.f32 0.5, %v514_v39 }
 0x675   :  { %2397 = vtanh.f32 %v612_v44 }
 0x676   :  { %2399 = vtanh.f32 %v517_v45 }
 0x67c   :  { %v2394_v42 = vpop.eup %2393 }
 0x67d   :  { %619 = vrot.lane.b32.xlu0 %v2394_v42, %s2502_s25 }
 0x67e   :  { %v2396_v43 = vpop.eup %2395 }
 0x67f   :  { %524 = vrot.lane.b32.xlu1 %v2396_v43, %s2502_s25  ;;  %v2398_v46 = vpop.eup %2397 }
 0x680   :  { %v2400_v47 = vpop.eup %2399  ;;  %v614_v48 = vmul.f32 0.5, %v2398_v46 }
 0x681   :  { %v519_v49 = vmul.f32 0.5, %v2400_v47 }
 0x682   :  { %v615_v51 = vadd.f32 0.5, %v614_v48 }
 0x683   :  { %v520_v54 = vadd.f32 0.5, %v519_v49 }
 0x684   :  { %v617_v57 = vmul.f32 %v615_v51, %v2682_v16 }
 0x685   :  { %v522_v60 = vmul.f32 %v520_v54, %v2684_v18 }
 0x6ef   :  { %v620_v52 = vpop.permute.xlu0 %619 }
 0x6f0   :  { %v622_v53 = vmul.f32 %v620_v52, %v615_v51 }
 0x6f1   :  { %v525_v55 = vpop.permute.xlu1 %524 }
 0x6f2   :  { %624 = vrot.lane.b32.xlu0 %v622_v53, %s2503_s1  ;;  %v527_v56 = vmul.f32 %v525_v55, %v520_v54 }
 0x6f4   :  { %529 = vrot.lane.b32.xlu1 %v527_v56, %s2503_s1 }
 0x764   :  { %v625_v58 = vpop.permute.xlu0 %624 }
 0x765   :  { %v2722_v59 = vadd.f32 %v625_v58, %v617_v57 }
 0x766   :  { %v530_v61 = vpop.permute.xlu1 %529 }
 0x767   :  { %2401 = vtanh.f32 %v2722_v59  ;;  %v2726_v62 = vadd.f32 %v530_v61, %v522_v60 }
 0x769   :  { %2403 = vtanh.f32 %v2726_v62 }
 0x771   :  { %v2402_v63 = vpop.eup %2401 }
 0x772   :  { %630 = vrot.lane.b32.xlu0 %v2402_v63, %s2502_s25 }
 0x773   :  { %v2404_v0 = vpop.eup %2403 }
 0x774   :  { %535 = vrot.lane.b32.xlu1 %v2404_v0, %s2502_s25 }
 0x7e4   :  { %v631_v3 = vpop.permute.xlu0 %630 }
 0x7e5   :  { %v633_v4 = vmul.f32 %v631_v3, %v615_v51 }
 0x7e6   :  { %v536_v5 = vpop.permute.xlu1 %535 }
 0x7e7   :  { %635 = vrot.lane.b32.xlu1 %v633_v4, %s2503_s1  ;;  %v538_v6 = vmul.f32 %v536_v5, %v520_v54  ;;  %v49_v54 = vld [vmem:[%s2951_s0 + $0x8] sm:$0x3] }
 0x7e9   :  { %639 = vrot.lane.b32.xlu0 %v538_v6, %s2502_s25 }
 0x7eb   :  { %84 = vperm.xlu1 %2374, %v48_v8  }
 0x859   :  { %v636_v9 = vpop.permute.xlu1 %635 }
 0x85a   :  { %2062 = vmatmul.mubr.msk.f32.vlgmr.msra.gmra.mrb[6].mxu0 %vm142_vm1, %v636_v9 }
 0x85b   :  { %2276 = vmatpush3.bf16.msra.mxu0 %v2614_v32  ;;  %2080 = vmatprep.mubr.msk.f32.mxu0 %vm2499_vm0, %v2500_v2  ;;  %v640_v12 = vpop.permute.xlu0 %639 }
 0x85c   :  { %2277 = vmatprep.subr.bf16.mxu0 %v2498_v1  ;;  %v642_v13 = vsel %vm142_vm1, %v636_v9, %v640_v12 }
 0x85d   :  { %2051 = vmatmul.mubr.msk.f32.vlgmr.msra.gmra.mrb[4].mxu1 %vm244_vm2, %v642_v13 }
 0x85e   :  { %2288 = vmatpush3.bf16.msra.mxu1 %v2570_v7  ;;  %2091 = vmatprep.mubr.msk.f32.mxu1 %vm2499_vm0, %v2500_v2 }
 0x85f   :  { %2279 = vmatpush3.bf16.msra.mxu0 %v2620_v34  ;;  %2289 = vmatprep.subr.bf16.mxu1 %v2498_v1 }
 0x860   :  { %2280 = vmatprep.subr.bf16.mxu0 %v2498_v1 }
 0x862   :  { %2291 = vmatpush3.bf16.msra.mxu1 %v2576_v10 }
 0x863   :  { %2282 = vmatpush3.bf16.msra.mxu0 %v2630_v37  ;;  %2292 = vmatprep.subr.bf16.mxu1 %v2498_v1 }
 0x864   :  { %2283 = vmatprep.subr.bf16.mxu0 %v2498_v1 }
 0x867   :  { %2285 = vmatpush3.bf16.msra.mxu0 %v2641_v41 }
 0x868   :  { %2304 = vmatprep.subr.bf16.mxu0 %v2498_v1 }
 0x86a   :  { %v85_v15 = vpop.permute.xlu1 %84 }
 0x86b   :  { %v116_v16 = vmul.f32 %v2591_v11, %v85_v15 }
 0x86d   :  { %v130_v17 = vadd.f32 %v2597_v14, %v116_v16 }
 0x92d   :  { %v806_v18 = vpop.f32.mrb[6].mxu0 }
 0x92e   :  { %v810_v19 = vadd.f32 %v806_v18, %v130_v17  ;;  %v2063_v20 = vpop.f32.mrb[7].mxu0 }
 0x930   :  { %2405 = vtanh.f32 %v810_v19  ;;  %v712_v21 = vpop.f32.mrb[4].mxu1  ;;  %v811_v26 = vmul.f32 0.5, %v810_v19 }
 0x931   :  { %v713_v22 = vadd.f32 %v2674_v50, %v712_v21  ;;  %v2052_v23 = vpop.f32.mrb[5].mxu1 }
 0x933   :  { %2407 = vtanh.f32 %v713_v22  ;;  %v716_v27 = vmul.f32 0.5, %v713_v22 }
 0x934   :  { %2409 = vtanh.f32 %v811_v26 }
 0x935   :  { %2411 = vtanh.f32 %v716_v27 }
 0x93a   :  { %v2406_v24 = vpop.eup %2405 }
 0x93b   :  { %818 = vrot.lane.b32.xlu1 %v2406_v24, %s2502_s25 }
 0x93d   :  { %v2408_v25 = vpop.eup %2407 }
 0x93e   :  { %723 = vrot.lane.b32.xlu0 %v2408_v25, %s2502_s25  ;;  %v2410_v28 = vpop.eup %2409 }
 0x93f   :  { %v813_v29 = vmul.f32 0.5, %v2410_v28  ;;  %v2412_v30 = vpop.eup %2411 }
 0x940   :  { %v718_v33 = vmul.f32 0.5, %v2412_v30 }
 0x941   :  { %v814_v31 = vadd.f32 0.5, %v813_v29 }
 0x942   :  { %v719_v38 = vadd.f32 0.5, %v718_v33 }
 0x943   :  { %v816_v42 = vmul.f32 %v814_v31, %v2722_v59 }
 0x944   :  { %v721_v45 = vmul.f32 %v719_v38, %v2726_v62 }
 0x9ad   :  { %v819_v35 = vpop.permute.xlu1 %818 }
 0x9ae   :  { %v821_v36 = vmul.f32 %v819_v35, %v814_v31 }
 0x9b0   :  { %823 = vrot.lane.b32.xlu1 %v821_v36, %s2503_s1  ;;  %v724_v39 = vpop.permute.xlu0 %723  ;;  %v50_v36 = vld [vmem:[%s2951_s0 + $0xa] sm:$0x3] }
 0x9b1   :  { %v726_v40 = vmul.f32 %v724_v39, %v719_v38 }
 0x9b3   :  { %728 = vrot.lane.b32.xlu0 %v726_v40, %s2503_s1 }
 0xa22   :  { %v824_v43 = vpop.permute.xlu1 %823 }
 0xa23   :  { %v2763_v44 = vadd.f32 %v824_v43, %v816_v42 }
 0xa25   :  { %2413 = vtanh.f32 %v2763_v44  ;;  %v729_v46 = vpop.permute.xlu0 %728 }
 0xa26   :  { %v2767_v47 = vadd.f32 %v729_v46, %v721_v45 }
 0xa28   :  { %2415 = vtanh.f32 %v2767_v47 }
 0xa2f   :  { %v2414_v48 = vpop.eup %2413 }
 0xa30   :  { %829 = vrot.lane.b32.xlu1 %v2414_v48, %s2502_s25 }
 0xa32   :  { %v2416_v49 = vpop.eup %2415 }
 0xa33   :  { %734 = vrot.lane.b32.xlu0 %v2416_v49, %s2502_s25 }
 0xaa2   :  { %v830_v51 = vpop.permute.xlu1 %829 }
 0xaa3   :  { %v832_v52 = vmul.f32 %v830_v51, %v814_v31 }
 0xaa5   :  { %834 = vrot.lane.b32.xlu0 %v832_v52, %s2503_s1  ;;  %v735_v53 = vpop.permute.xlu0 %734 }
 0xaa6   :  { %v737_v55 = vmul.f32 %v735_v53, %v719_v38 }
 0xaa8   :  { %838 = vrot.lane.b32.xlu1 %v737_v55, %s2502_s25 }
 0xaa9   :  { %89 = vperm.xlu0 %2373, %v49_v54  }
 0xb17   :  { %v835_v56 = vpop.permute.xlu0 %834 }
 0xb18   :  { %2092 = vmatmul.mubr.msk.f32.vlgmr.msra.gmra.mrb[6].mxu1 %vm142_vm1, %v835_v56 }
 0xb19   :  { %2294 = vmatpush3.bf16.msra.mxu1 %v2614_v32  ;;  %2110 = vmatprep.mubr.msk.f32.mxu1 %vm2499_vm0, %v2500_v2 }
 0xb1a   :  { %2295 = vmatprep.subr.bf16.mxu1 %v2498_v1  ;;  %v839_v57 = vpop.permute.xlu1 %838 }
 0xb1b   :  { %v841_v58 = vsel %vm142_vm1, %v835_v56, %v839_v57 }
 0xb1c   :  { %2081 = vmatmul.mubr.msk.f32.vlgmr.msra.gmra.mrb[8].mxu0 %vm244_vm2, %v841_v58 }
 0xb1d   :  { %2297 = vmatpush3.bf16.msra.mxu1 %v2620_v34  ;;  %2306 = vmatpush3.bf16.msra.mxu0 %v2570_v7 }
 0xb1e   :  { %2298 = vmatprep.subr.bf16.mxu1 %v2498_v1  ;;  %2307 = vmatprep.subr.bf16.mxu0 %v2498_v1 }
 0xb1f   :  { %2121 = vmatprep.mubr.msk.f32.mxu0 %vm2499_vm0, %v2500_v2 }
 0xb21   :  { %2300 = vmatpush3.bf16.msra.mxu1 %v2630_v37  ;;  %2309 = vmatpush3.bf16.msra.mxu0 %v2576_v10 }
 0xb22   :  { %2301 = vmatprep.subr.bf16.mxu1 %v2498_v1  ;;  %2310 = vmatprep.subr.bf16.mxu0 %v2498_v1 }
 0xb25   :  { %2303 = vmatpush3.bf16.msra.mxu1 %v2641_v41 }
 0xb26   :  { %2322 = vmatprep.subr.bf16.mxu1 %v2498_v1 }
 0xb28   :  { %v90_v59 = vpop.permute.xlu0 %89 }
 0xb29   :  { %v117_v60 = vmul.f32 %v2591_v11, %v90_v59 }
 0xb2b   :  { %v131_v61 = vadd.f32 %v2597_v14, %v117_v60 }
 0xbeb   :  { %v1005_v62 = vpop.f32.mrb[6].mxu1 }
 0xbec   :  { %v1009_v63 = vadd.f32 %v1005_v62, %v131_v61  ;;  %v2093_v0 = vpop.f32.mrb[7].mxu1 }
 0xbee   :  { %2417 = vtanh.f32 %v1009_v63  ;;  %v1010_v9 = vmul.f32 0.5, %v1009_v63 }
 0xbef   :  { %v911_v3 = vpop.f32.mrb[8].mxu0 }
 0xbf0   :  { %v912_v4 = vadd.f32 %v2674_v50, %v911_v3  ;;  %v2082_v5 = vpop.f32.mrb[9].mxu0 }
 0xbf2   :  { %2419 = vtanh.f32 %v912_v4  ;;  %v915_v12 = vmul.f32 0.5, %v912_v4 }
 0xbf3   :  { %2421 = vtanh.f32 %v1010_v9 }
 0xbf4   :  { %2423 = vtanh.f32 %v915_v12 }
 0xbf8   :  { %v2418_v6 = vpop.eup %2417 }
 0xbf9   :  { %1017 = vrot.lane.b32.xlu0 %v2418_v6, %s2502_s25 }
 0xbfc   :  { %v2420_v8 = vpop.eup %2419 }
 0xbfd   :  { %922 = vrot.lane.b32.xlu1 %v2420_v8, %s2502_s25  ;;  %v2422_v13 = vpop.eup %2421 }
 0xbfe   :  { %v1012_v15 = vmul.f32 0.5, %v2422_v13  ;;  %v2424_v16 = vpop.eup %2423 }
 0xbff   :  { %v917_v19 = vmul.f32 0.5, %v2424_v16 }
 0xc00   :  { %v1013_v17 = vadd.f32 0.5, %v1012_v15 }
 0xc01   :  { %v918_v21 = vadd.f32 0.5, %v917_v19 }
 0xc02   :  { %v1015_v24 = vmul.f32 %v1013_v17, %v2763_v44 }
 0xc03   :  { %v920_v27 = vmul.f32 %v918_v21, %v2767_v47 }
 0xc6b   :  { %v1018_v18 = vpop.permute.xlu0 %1017 }
 0xc6c   :  { %v1020_v20 = vmul.f32 %v1018_v18, %v1013_v17 }
 0xc6e   :  { %1022 = vrot.lane.b32.xlu0 %v1020_v20, %s2503_s1  ;;  %v51_v20 = vld [vmem:[%s2951_s0 + $0xc] sm:$0x3] }
 0xc6f   :  { %v923_v22 = vpop.permute.xlu1 %922 }
 0xc70   :  { %v925_v23 = vmul.f32 %v923_v22, %v918_v21 }
 0xc72   :  { %927 = vrot.lane.b32.xlu1 %v925_v23, %s2503_s1 }
 0xce0   :  { %v1023_v25 = vpop.permute.xlu0 %1022 }
 0xce1   :  { %v2804_v26 = vadd.f32 %v1023_v25, %v1015_v24 }
 0xce3   :  { %2425 = vtanh.f32 %v2804_v26 }
 0xce4   :  { %v928_v28 = vpop.permute.xlu1 %927 }
 0xce5   :  { %v2808_v29 = vadd.f32 %v928_v28, %v920_v27 }
 0xce7   :  { %2427 = vtanh.f32 %v2808_v29 }
 0xced   :  { %v2426_v30 = vpop.eup %2425 }
 0xcee   :  { %1028 = vrot.lane.b32.xlu0 %v2426_v30, %s2502_s25 }
 0xcf1   :  { %v2428_v31 = vpop.eup %2427 }
 0xcf2   :  { %933 = vrot.lane.b32.xlu1 %v2428_v31, %s2502_s25 }
 0xd60   :  { %v1029_v33 = vpop.permute.xlu0 %1028 }
 0xd61   :  { %v1031_v35 = vmul.f32 %v1029_v33, %v1013_v17 }
 0xd63   :  { %1033 = vrot.lane.b32.xlu1 %v1031_v35, %s2503_s1 }
 0xd64   :  { %v934_v38 = vpop.permute.xlu1 %933 }
 0xd65   :  { %v936_v39 = vmul.f32 %v934_v38, %v918_v21 }
 0xd67   :  { %94 = vperm.xlu1 %2374, %v50_v36   ;;  %1037 = vrot.lane.b32.xlu0 %v936_v39, %s2502_s25 }
 0xdd5   :  { %v1034_v40 = vpop.permute.xlu1 %1033 }
 0xdd6   :  { %2122 = vmatmul.mubr.msk.f32.vlgmr.msra.gmra.mrb[10].mxu0 %vm142_vm1, %v1034_v40 }
 0xdd7   :  { %2312 = vmatpush3.bf16.msra.mxu0 %v2614_v32  ;;  %2140 = vmatprep.mubr.msk.f32.mxu0 %vm2499_vm0, %v2500_v2 }
 0xdd8   :  { %2313 = vmatprep.subr.bf16.mxu0 %v2498_v1 }
 0xdd9   :  { %v1038_v42 = vpop.permute.xlu0 %1037 }
 0xdda   :  { %v1040_v43 = vsel %vm142_vm1, %v1034_v40, %v1038_v42 }
 0xddb   :  { %2315 = vmatpush3.bf16.msra.mxu0 %v2620_v34  ;;  %2111 = vmatmul.mubr.msk.f32.vlgmr.msra.gmra.mrb[8].mxu1 %vm244_vm2, %v1040_v43 }
 0xddc   :  { %2316 = vmatprep.subr.bf16.mxu0 %v2498_v1  ;;  %2324 = vmatpush3.bf16.msra.mxu1 %v2570_v7 }
 0xddd   :  { %2151 = vmatprep.mubr.msk.f32.mxu1 %vm2499_vm0, %v2500_v2  ;;  %2325 = vmatprep.subr.bf16.mxu1 %v2498_v1 }
 0xddf   :  { %2318 = vmatpush3.bf16.msra.mxu0 %v2630_v37 }
 0xde0   :  { %2319 = vmatprep.subr.bf16.mxu0 %v2498_v1  ;;  %2327 = vmatpush3.bf16.msra.mxu1 %v2576_v10 }
 0xde1   :  { %2328 = vmatprep.subr.bf16.mxu1 %v2498_v1 }
 0xde3   :  { %2321 = vmatpush3.bf16.msra.mxu0 %v2641_v41 }
 0xde4   :  { %2340 = vmatprep.subr.bf16.mxu0 %v2498_v1 }
 0xde6   :  { %v95_v44 = vpop.permute.xlu1 %94 }
 0xde7   :  { %v118_v45 = vmul.f32 %v2591_v11, %v95_v44 }
 0xde9   :  { %v132_v46 = vadd.f32 %v2597_v14, %v118_v45 }
 0xea9   :  { %v1204_v47 = vpop.f32.mrb[10].mxu0 }
 0xeaa   :  { %v1208_v48 = vadd.f32 %v1204_v47, %v132_v46  ;;  %v2123_v49 = vpop.f32.mrb[11].mxu0 }
 0xeac   :  { %2429 = vtanh.f32 %v1208_v48  ;;  %v1209_v56 = vmul.f32 0.5, %v1208_v48 }
 0xeae   :  { %v1110_v51 = vpop.f32.mrb[8].mxu1 }
 0xeaf   :  { %v1111_v52 = vadd.f32 %v2674_v50, %v1110_v51  ;;  %v2112_v53 = vpop.f32.mrb[9].mxu1 }
 0xeb1   :  { %2431 = vtanh.f32 %v1111_v52  ;;  %v1114_v57 = vmul.f32 0.5, %v1111_v52 }
 0xeb2   :  { %2433 = vtanh.f32 %v1209_v56 }
 0xeb3   :  { %2435 = vtanh.f32 %v1114_v57 }
 0xeb6   :  { %v2430_v54 = vpop.eup %2429 }
 0xeb7   :  { %1216 = vrot.lane.b32.xlu1 %v2430_v54, %s2502_s25 }
 0xebb   :  { %v2432_v55 = vpop.eup %2431 }
 0xebc   :  { %1121 = vrot.lane.b32.xlu0 %v2432_v55, %s2502_s25  ;;  %v2434_v58 = vpop.eup %2433 }
 0xebd   :  { %v1211_v59 = vmul.f32 0.5, %v2434_v58  ;;  %v2436_v60 = vpop.eup %2435 }
 0xebe   :  { %v1116_v0 = vmul.f32 0.5, %v2436_v60 }
 0xebf   :  { %v1212_v61 = vadd.f32 0.5, %v1211_v59 }
 0xec0   :  { %v1117_v3 = vadd.f32 0.5, %v1116_v0 }
 0xec1   :  { %v1214_v6 = vmul.f32 %v1212_v61, %v2804_v26 }
 0xec2   :  { %v1119_v12 = vmul.f32 %v1117_v3, %v2808_v29 }
 0xf29   :  { %v1217_v62 = vpop.permute.xlu1 %1216 }
 0xf2a   :  { %v1219_v63 = vmul.f32 %v1217_v62, %v1212_v61  ;;  %v52_v62 = vld [vmem:[%s2951_s0 + $0xe] sm:$0x3] }
 0xf2c   :  { %1221 = vrot.lane.b32.xlu1 %v1219_v63, %s2503_s1 }
 0xf2e   :  { %v1122_v4 = vpop.permute.xlu0 %1121 }
 0xf2f   :  { %v1124_v5 = vmul.f32 %v1122_v4, %v1117_v3 }
 0xf31   :  { %1126 = vrot.lane.b32.xlu0 %v1124_v5, %s2503_s1 }
 0xf9e   :  { %v1222_v8 = vpop.permute.xlu1 %1221 }
 0xf9f   :  { %v2845_v9 = vadd.f32 %v1222_v8, %v1214_v6 }
 0xfa1   :  { %2437 = vtanh.f32 %v2845_v9 }
 0xfa3   :  { %v1127_v13 = vpop.permute.xlu0 %1126 }
 0xfa4   :  { %v2849_v15 = vadd.f32 %v1127_v13, %v1119_v12 }
 0xfa6   :  { %2439 = vtanh.f32 %v2849_v15 }
 0xfab   :  { %v2438_v16 = vpop.eup %2437 }
 0xfac   :  { %1227 = vrot.lane.b32.xlu1 %v2438_v16, %s2502_s25 }
 0xfb0   :  { %v2440_v17 = vpop.eup %2439 }
 0xfb1   :  { %1132 = vrot.lane.b32.xlu0 %v2440_v17, %s2502_s25 }
0x101e   :  { %v1228_v18 = vpop.permute.xlu1 %1227 }
0x101f   :  { %v1230_v19 = vmul.f32 %v1228_v18, %v1212_v61 }
0x1021   :  { %1232 = vrot.lane.b32.xlu0 %v1230_v19, %s2503_s1 }
0x1023   :  { %v1133_v21 = vpop.permute.xlu0 %1132 }
0x1024   :  { %v1135_v22 = vmul.f32 %v1133_v21, %v1117_v3 }
0x1025   :  { %99 = vperm.xlu0 %2373, %v51_v20  }
0x1026   :  { %1236 = vrot.lane.b32.xlu1 %v1135_v22, %s2502_s25 }
0x1093   :  { %v1233_v23 = vpop.permute.xlu0 %1232 }
0x1094   :  { %2152 = vmatmul.mubr.msk.f32.vlgmr.msra.gmra.mrb[10].mxu1 %vm142_vm1, %v1233_v23 }
0x1095   :  { %2330 = vmatpush3.bf16.msra.mxu1 %v2614_v32  ;;  %2170 = vmatprep.mubr.msk.f32.mxu1 %vm2499_vm0, %v2500_v2 }
0x1096   :  { %2331 = vmatprep.subr.bf16.mxu1 %v2498_v1 }
0x1098   :  { %v1237_v24 = vpop.permute.xlu1 %1236 }
0x1099   :  { %2333 = vmatpush3.bf16.msra.mxu1 %v2620_v34  ;;  %v1239_v25 = vsel %vm142_vm1, %v1233_v23, %v1237_v24 }
0x109a   :  { %2334 = vmatprep.subr.bf16.mxu1 %v2498_v1  ;;  %2141 = vmatmul.mubr.msk.f32.vlgmr.msra.gmra.mrb[12].mxu0 %vm244_vm2, %v1239_v25 }
0x109b   :  { %2342 = vmatpush3.bf16.msra.mxu0 %v2570_v7  ;;  %2181 = vmatprep.mubr.msk.f32.mxu0 %vm2499_vm0, %v2500_v2 }
0x109c   :  { %2343 = vmatprep.subr.bf16.mxu0 %v2498_v1 }
0x109d   :  { %2336 = vmatpush3.bf16.msra.mxu1 %v2630_v37 }
0x109e   :  { %2337 = vmatprep.subr.bf16.mxu1 %v2498_v1 }
0x109f   :  { %2345 = vmatpush3.bf16.msra.mxu0 %v2576_v10 }
0x10a0   :  { %2346 = vmatprep.subr.bf16.mxu0 %v2498_v1 }
0x10a1   :  { %2339 = vmatpush3.bf16.msra.mxu1 %v2641_v41 }
0x10a2   :  { %2358 = vmatprep.subr.bf16.mxu1 %v2498_v1 }
0x10a4   :  { %v100_v26 = vpop.permute.xlu0 %99 }
0x10a5   :  { %v119_v7 = vmul.f32 %v2591_v11, %v100_v26 }
0x10a7   :  { %v133_v27 = vadd.f32 %v2597_v14, %v119_v7 }
0x1167   :  { %v1403_v28 = vpop.f32.mrb[10].mxu1 }
0x1168   :  { %v1407_v29 = vadd.f32 %v1403_v28, %v133_v27  ;;  %v2153_v30 = vpop.f32.mrb[11].mxu1 }
0x116a   :  { %2441 = vtanh.f32 %v1407_v29  ;;  %v1408_v38 = vmul.f32 0.5, %v1407_v29 }
0x116d   :  { %v1309_v31 = vpop.f32.mrb[12].mxu0 }
0x116e   :  { %v1310_v33 = vadd.f32 %v2674_v50, %v1309_v31  ;;  %v2142_v35 = vpop.f32.mrb[13].mxu0 }
0x1170   :  { %2443 = vtanh.f32 %v1310_v33  ;;  %v1313_v39 = vmul.f32 0.5, %v1310_v33 }
0x1171   :  { %2445 = vtanh.f32 %v1408_v38 }
0x1172   :  { %2447 = vtanh.f32 %v1313_v39 }
0x1174   :  { %v2442_v10 = vpop.eup %2441 }
0x1175   :  { %1415 = vrot.lane.b32.xlu0 %v2442_v10, %s2502_s25 }
0x117a   :  { %v2444_v36 = vpop.eup %2443 }
0x117b   :  { %1320 = vrot.lane.b32.xlu1 %v2444_v36, %s2502_s25  ;;  %v2446_v40 = vpop.eup %2445 }
0x117c   :  { %v1410_v42 = vmul.f32 0.5, %v2446_v40  ;;  %v2448_v43 = vpop.eup %2447 }
0x117d   :  { %v1315_v47 = vmul.f32 0.5, %v2448_v43 }
0x117e   :  { %v1411_v44 = vadd.f32 0.5, %v1410_v42 }
0x117f   :  { %v1316_v48 = vadd.f32 0.5, %v1315_v47 }
0x1180   :  { %v1413_v52 = vmul.f32 %v1411_v44, %v2845_v9 }
0x1181   :  { %v1318_v55 = vmul.f32 %v1316_v48, %v2849_v15 }
0x11e7   :  { %v1416_v45 = vpop.permute.xlu0 %1415 }
0x11e8   :  { %v1418_v46 = vmul.f32 %v1416_v45, %v1411_v44 }
0x11ea   :  { %1420 = vrot.lane.b32.xlu0 %v1418_v46, %s2503_s1 }
0x11ed   :  { %v1321_v49 = vpop.permute.xlu1 %1320 }
0x11ee   :  { %v1323_v51 = vmul.f32 %v1321_v49, %v1316_v48 }
0x11f0   :  { %1325 = vrot.lane.b32.xlu1 %v1323_v51, %s2503_s1 }
0x125c   :  { %v1421_v53 = vpop.permute.xlu0 %1420 }
0x125d   :  { %v2886_v54 = vadd.f32 %v1421_v53, %v1413_v52 }
0x125f   :  { %2449 = vtanh.f32 %v2886_v54 }
0x1262   :  { %v1326_v56 = vpop.permute.xlu1 %1325 }
0x1263   :  { %v2890_v57 = vadd.f32 %v1326_v56, %v1318_v55 }
0x1265   :  { %2451 = vtanh.f32 %v2890_v57 }
0x1269   :  { %v2450_v58 = vpop.eup %2449 }
0x126a   :  { %1426 = vrot.lane.b32.xlu0 %v2450_v58, %s2502_s25  ;;  %v1735_v58 = vld [vmem:[%s2957_s6 + $0x10] sm:$0xff] }
0x126f   :  { %v2452_v59 = vpop.eup %2451 }
0x1270   :  { %1331 = vrot.lane.b32.xlu1 %v2452_v59, %s2502_s25 }
0x12dc   :  { %v1427_v60 = vpop.permute.xlu0 %1426 }
0x12dd   :  { %v1429_v61 = vmul.f32 %v1427_v60, %v1411_v44  ;;  %v1736_v60 = vld [vmem:[%s2957_s6 + $0x18] sm:$0xff] }
0x12df   :  { %1431 = vrot.lane.b32.xlu1 %v1429_v61, %s2503_s1  ;;  %v2362_v61 = vpack.c.bf16 %v1736_v60, %v1735_v58 }
0x12e2   :  { %v1332_v63 = vpop.permute.xlu1 %1331 }
0x12e3   :  { %104 = vperm.xlu1 %2374, %v52_v62   ;;  %v1334_v0 = vmul.f32 %v1332_v63, %v1316_v48 }
0x12e5   :  { %1435 = vrot.lane.b32.xlu0 %v1334_v0, %s2502_s25 }
0x1351   :  { %v1432_v3 = vpop.permute.xlu1 %1431 }
0x1352   :  { %2182 = vmatmul.mubr.msk.f32.vlgmr.msra.gmra.mrb[14].mxu0 %vm142_vm1, %v1432_v3 }
0x1353   :  { %2348 = vmatpush3.bf16.msra.mxu0 %v2614_v32  ;;  %2200 = vmatprep.mubr.msk.f32.mxu0 %vm2499_vm0, %v2500_v2 }
0x1354   :  { %2349 = vmatprep.subr.bf16.mxu0 %v2498_v1 }
0x1357   :  { %2351 = vmatpush3.bf16.msra.mxu0 %v2620_v34  ;;  %v1436_v4 = vpop.permute.xlu0 %1435 }
0x1358   :  { %2352 = vmatprep.subr.bf16.mxu0 %v2498_v1  ;;  %v1438_v5 = vsel %vm142_vm1, %v1432_v3, %v1436_v4  ;;  %v1844_v4 = vld [vmem:[#allocation2] ss:$0 sm:$0xff] }
0x1359   :  { %2171 = vmatmul.mubr.msk.f32.vlgmr.msra.gmra.mrb[12].mxu1 %vm244_vm2, %v1438_v5 }
0x135a   :  { %2211 = vmatprep.mubr.msk.f32.mxu1 %vm2499_vm0, %v2500_v2 }
0x135b   :  { %2354 = vmatpush3.bf16.msra.mxu0 %v2630_v37 }
0x135c   :  { %2355 = vmatprep.subr.bf16.mxu0 %v2498_v1 }
0x135f   :  { %2357 = vmatpush3.bf16.msra.mxu0 %v2641_v41 }
0x1362   :  { %v105_v32 = vpop.permute.xlu1 %104 }
0x1363   :  { %v120_v6 = vmul.f32 %v2591_v11, %v105_v32 }
0x1365   :  { %v134_v34 = vadd.f32 %v2597_v14, %v120_v6 }
0x1425   :  { %v1602_v8 = vpop.f32.mrb[14].mxu0 }
0x1426   :  { %v1606_v9 = vadd.f32 %v1602_v8, %v134_v34  ;;  %v2183_v12 = vpop.f32.mrb[15].mxu0 }
0x1428   :  { %2453 = vtanh.f32 %v1606_v9  ;;  %v1607_v41 = vmul.f32 0.5, %v1606_v9 }
0x142c   :  { %v1508_v13 = vpop.f32.mrb[12].mxu1 }
0x142d   :  { %v1509_v15 = vadd.f32 %v2674_v50, %v1508_v13  ;;  %v2172_v37 = vpop.f32.mrb[13].mxu1 }
0x142f   :  { %2455 = vtanh.f32 %v1509_v15  ;;  %v1512_v11 = vmul.f32 0.5, %v1509_v15 }
0x1430   :  { %2457 = vtanh.f32 %v1607_v41 }
0x1431   :  { %2459 = vtanh.f32 %v1512_v11 }
0x1432   :  { %v2454_v16 = vpop.eup %2453 }
0x1433   :  { %1614 = vrot.lane.b32.xlu1 %v2454_v16, %s2502_s25 }
0x1439   :  { %v2456_v2 = vpop.eup %2455 }
0x143a   :  { %1519 = vrot.lane.b32.xlu0 %v2456_v2, %s2502_s25  ;;  %v2458_v14 = vpop.eup %2457 }
0x143b   :  { %v1609_v17 = vmul.f32 0.5, %v2458_v14  ;;  %v2460_v19 = vpop.eup %2459 }
0x143c   :  { %v1514_v22 = vmul.f32 0.5, %v2460_v19 }
0x143d   :  { %v1610_v18 = vadd.f32 0.5, %v1609_v17 }
0x143e   :  { %v1515_v23 = vadd.f32 0.5, %v1514_v22 }
0x143f   :  { %v1612_v26 = vmul.f32 %v1610_v18, %v2886_v54 }
0x1440   :  { %v1517_v28 = vmul.f32 %v1515_v23, %v2890_v57  ;;  %v1734_v57 = vld [vmem:[%s2957_s6 + $0x8] sm:$0xff] }
0x14a5   :  { %v1615_v20 = vpop.permute.xlu1 %1614 }
0x14a6   :  { %v1617_v21 = vmul.f32 %v1615_v20, %v1610_v18 }
0x14a8   :  { %1619 = vrot.lane.b32.xlu1 %v1617_v21, %s2503_s1 }
0x14ac   :  { %v1520_v24 = vpop.permute.xlu0 %1519 }
0x14ad   :  { %v1522_v25 = vmul.f32 %v1520_v24, %v1515_v23 }
0x14af   :  { %1524 = vrot.lane.b32.xlu0 %v1522_v25, %s2503_s1 }
0x151a   :  { %v1620_v7 = vpop.permute.xlu1 %1619 }
0x151b   :  { %v1622_v27 = vadd.f32 %v1620_v7, %v1612_v26 }
0x151d   :  { %2461 = vtanh.f32 %v1622_v27 }
0x1521   :  { %v1525_v29 = vpop.permute.xlu0 %1524 }
0x1522   :  { %v1527_v30 = vadd.f32 %v1525_v29, %v1517_v28 }
0x1524   :  { %2463 = vtanh.f32 %v1527_v30 }
0x1527   :  { %v2462_v31 = vpop.eup %2461 }
0x1528   :  { %1625 = vrot.lane.b32.xlu1 %v2462_v31, %s2502_s25 }
0x152e   :  { %v2464_v33 = vpop.eup %2463 }
0x152f   :  { %1530 = vrot.lane.b32.xlu0 %v2464_v33, %s2502_s25 }
0x159a   :  { %v1626_v35 = vpop.permute.xlu1 %1625 }
0x159b   :  { %v1628_v10 = vmul.f32 %v1626_v35, %v1610_v18 }
0x159d   :  { %1630 = vrot.lane.b32.xlu0 %v1628_v10, %s2503_s1 }
0x15a1   :  { %v1531_v36 = vpop.permute.xlu0 %1530 }
0x15a2   :  { %v1533_v38 = vmul.f32 %v1531_v36, %v1515_v23 }
0x15a4   :  { %1634 = vrot.lane.b32.xlu1 %v1533_v38, %s2502_s25 }
0x160f   :  { %v1631_v39 = vpop.permute.xlu0 %1630 }
0x1616   :  { %v1635_v40 = vpop.permute.xlu1 %1634 }
0x1617   :  { %v1637_v42 = vsel %vm142_vm1, %v1631_v39, %v1635_v40 }
0x1618   :  { %2201 = vmatmul.mubr.msk.f32.vlgmr.msra.gmra.mrb[16].mxu0 %vm244_vm2, %v1637_v42 }
0x16eb   :  { %v1707_v43 = vpop.f32.mrb[16].mxu0 }
0x16ec   :  { %v1708_v44 = vadd.f32 %v2674_v50, %v1707_v43  ;;  %v2202_v45 = vpop.f32.mrb[17].mxu0  ;;  %v1733_v50 = vld [vmem:[%s2957_s6] sm:$0xff] }
0x16ed   :  { %v2359_v59 = vpack.c.bf16 %v1734_v57, %v1733_v50 }
0x16ee   :  { %2465 = vtanh.f32 %v1708_v44  ;;  %v1711_v47 = vmul.f32 0.5, %v1708_v44 }
0x16ef   :  { %2360 = vmatpush3.bf16.msra.mxu1 %v2359_v59 }
0x16f0   :  { %2467 = vtanh.f32 %v1711_v47  ;;  %2361 = vmatprep.subr.bf16.mxu1 %v2498_v1 }
0x16f3   :  { %2363 = vmatpush3.bf16.msra.mxu1 %v2362_v61 }
0x16f8   :  { %v2466_v46 = vpop.eup %2465 }
0x16f9   :  { %1718 = vrot.lane.b32.xlu0 %v2466_v46, %s2502_s25 }
0x16fa   :  { %v2468_v48 = vpop.eup %2467 }
0x16fb   :  { %v1713_v49 = vmul.f32 0.5, %v2468_v48 }
0x16fd   :  { %v1714_v51 = vadd.f32 0.5, %v1713_v49 }
0x16ff   :  { %v1716_v54 = vmul.f32 %v1714_v51, %v1527_v30 }
0x176b   :  { %v1719_v52 = vpop.permute.xlu0 %1718 }
0x176c   :  { %v1721_v53 = vmul.f32 %v1719_v52, %v1714_v51 }
0x176e   :  { %1723 = vrot.lane.b32.xlu1 %v1721_v53, %s2503_s1 }
0x17e0   :  { %v1724_v55 = vpop.permute.xlu1 %1723 }
0x17e1   :  { %v1726_v56 = vadd.f32 %v1724_v55, %v1716_v54 }
0x17e3   :  { %2469 = vtanh.f32 %v1726_v56 }
0x17ed   :  { %v2470_v62 = vpop.eup %2469 }
0x17ee   :  { %1729 = vrot.lane.b32.xlu0 %v2470_v62, %s2502_s25 }
0x1860   :  { %v1730_v63 = vpop.permute.xlu0 %1729 }
0x1861   :  { %v1732_v0 = vmul.f32 %v1730_v63, %v1714_v51 }
0x1863   :  { %1745 = vrot.lane.b32.xlu1 %v1732_v0, %s2503_s1 }
0x18d5   :  { %v1746_v3 = vpop.permute.xlu1 %1745 }
0x18d6   :  { %2212 = vmatmul.mubr.msk.f32.vlgmr.msra.gmra.mrb[14].mxu1 %vm142_vm1, %v1746_v3 }
0x19a9   :  { %v1815_v5 = vpop.f32.mrb[14].mxu1 }
0x19aa   :  { %v1816_v32 = vadd.f32 %v1844_v4, %v1815_v5  ;;  %v2213_v6 = vpop.f32.mrb[15].mxu1 }
0x19ac   :  { %1820 = vst.msk [vmem:[%s2959_s8] sm:$0x3] %vm1819_vm3, %v1816_v32 }
0x19ad   :  { %1825 = vsyncpa [#allocation4], 1 }

</bundles_post_ra>
